<compile_context>
chip_gen: v7x
topology: tpu7x:2x2x1
jax: 0.10.0
libtpu: 0.0.40
codegen_flags: <defaults>
</compile_context>

<pallas_src>
import functools

import jax
import jax.numpy as jnp
from jax import lax
from jax.experimental import pallas as pl
from jax.experimental.pallas import tpu as pltpu


def _attention_kernel(x_ref, wqkv_ref, wout_ref, bout_ref, o_ref, *,
                      gblk, seq, heads, dim_head, scale, project_out):
    rows = x_ref.shape[0]                    # rows = gblk * seq
    inner = heads * dim_head
    mxu_dt = x_ref.dtype                     # MXU operand dtype = caller dtype

    # Fused QKV projection for all gblk groups at once: (rows, D) @ (D, 3*inner)
    # on the MXU with f32 accumulation.
    qkv = jnp.dot(x_ref[...], wqkv_ref[...],
                  preferred_element_type=jnp.float32)          # (rows, 3*inner) f32
    qkv = qkv.astype(mxu_dt)                 # ONE block-wide cast back to the MXU dtype

    def head_batch(base):
        # Gather the dh-wide per-head column slices once per tensor and expose
        # (head, group) as the batch dim of the attention matmuls.
        cols = [qkv[:, base + h * dim_head:base + (h + 1) * dim_head]
                for h in range(heads)]
        t = jnp.stack(cols, axis=0)                            # (heads, rows, dh)
        # Tile-aligned split of the row dim (seq is the sublane-aligned minor part):
        return t.reshape(heads * gblk, seq, dim_head)          # (heads*gblk, seq, dh)

    q = head_batch(0)
    k = head_batch(inner)
    v = head_batch(2 * inner)

    # Batched scores over (head, group): (HG, N, dh) x (HG, N, dh) -> (HG, N, N), f32.
    s = jnp.einsum("bqd,bkd->bqk", q, k,
                   preferred_element_type=jnp.float32) * scale

    # Softmax over keys, f32 math; normalization via EUP approximate reciprocal.
    s = s - jnp.max(s, axis=-1, keepdims=True)
    p = jnp.exp(s)
    p = p * pl.reciprocal(jnp.sum(p, axis=-1, keepdims=True), approx=True)

    # (HG, N, N) @ (HG, N, dh) -> (HG, N, dh), f32 accumulation.
    o = jnp.einsum("bqk,bkd->bqd", p.astype(mxu_dt), v,
                   preferred_element_type=jnp.float32)

    # Output projection.  o stays head-major (heads, rows, dh), so no head->lane
    # relayout is needed: one batched dot against W_out viewed as (heads, dh, D),
    # heads folded with cheap f32 adds (identical FLOPs to a fused K=inner matmul).
    o = o.reshape(heads, gblk * seq, dim_head)                 # (heads, rows, dh)
    if project_out:
        y = jnp.einsum("hrd,hde->hre", o.astype(mxu_dt), wout_ref[...],
                       preferred_element_type=jnp.float32)     # (heads, rows, D)
        y = jnp.sum(y, axis=0)                                 # (rows, D)
    else:
        y = o[0]                                               # nn.Identity: heads==1, dh==D

    # Single full-view store of the whole (rows, D) output block.
    o_ref[...] = (y + bout_ref[...]).astype(o_ref.dtype)


def _choose_group_block(n_groups, seq, dim, heads, dim_head,
                        work_budget_bytes=12 * 2**20):
    """How many (batch, patch) groups each grid step processes.

    Largest divisor of n_groups such that (a) at least two grid steps remain when
    possible (v7x megacore: the "parallel" grid axis is split across 2 TensorCores),
    (b) the row block stays sublane-aligned, and (c) the per-step f32 working set
    stays well inside VMEM on every generation (v7x scoped default: 32 of 64 MiB).
    """
    inner = heads * dim_head
    best = 1
    for cand in range(1, n_groups + 1):
        if n_groups % cand:
            continue
        if n_groups >= 2 and n_groups // cand < 2:
            continue
        rows = cand * seq
        if rows % 8 and rows != n_groups * seq:
            continue
        work = 4 * (rows * 3 * inner * 2                      # qkv f32 + mxu-dtype copy
                    + 3 * cand * heads * seq * dim_head        # q, k, v head-batched
                    + 2 * cand * heads * seq * seq             # scores + probs
                    + cand * heads * seq * dim_head            # attn @ v
                    + (heads + 1) * rows * dim)                # per-head y + folded y
        if work > work_budget_bytes:
            continue
        best = cand
    return best


def attention(x, w_qkv, w_out=None, b_out=None, *, heads=8, dim_head=64):
    """x: (B, P, N, D). w_qkv: (D, 3*heads*dim_head). w_out: (inner, D). b_out: (D,)."""
    B, P, N, D = x.shape
    inner = heads * dim_head
    assert w_qkv.shape == (D, 3 * inner)

    project_out = not (heads == 1 and dim_head == D)
    if not project_out:
        # nn.Identity(): dummies keep one call signature; kernel skips the matmul.
        w_out = jnp.eye(D, dtype=x.dtype)
        b_out = jnp.zeros((D,), dtype=x.dtype)
    assert w_out.shape == (inner, D) and b_out.shape == (D,)

    G = B * P
    gblk = _choose_group_block(G, N, D, heads, dim_head)
    steps = G // gblk
    rows = gblk * N

    # Flatten (B, P, N) -> rows so each grid step sees a 2-D (rows, D) slab and the
    # in-kernel matmuls get a large M dim; these wrapper reshapes are free.
    x2 = x.reshape(G * N, D)
    w_out_h = w_out.reshape(heads, dim_head, D)      # head-major view for the kernel
    b2 = b_out.astype(jnp.float32).reshape(1, D)
    scale = float(dim_head) ** (-0.5)

    kernel = functools.partial(
        _attention_kernel, gblk=gblk, seq=N, heads=heads, dim_head=dim_head,
        scale=scale, project_out=project_out)

    # Advisory cost estimate so XLA schedules surrounding ops sensibly.
    flops = (2 * G * N * D * 3 * inner                       # qkv projection
             + 2 * 2 * G * heads * N * N * dim_head          # scores + attn @ v
             + (2 * G * N * inner * D if project_out else 0))  # output projection
    itemsize = jnp.dtype(x.dtype).itemsize
    w_item = jnp.dtype(w_qkv.dtype).itemsize
    bytes_accessed = int(2 * G * N * D * itemsize
                         + (w_qkv.size + w_out.size + b_out.size) * w_item)
    cost = pl.CostEstimate(flops=int(flops),
                           transcendentals=int(G * heads * N * N),
                           bytes_accessed=bytes_accessed)

    # VMEM limit from the actual footprint (double-buffered I/O tiles, resident
    # weights, f32 intermediates) plus modest headroom — no 32 MiB floor.
    f32 = 4
    interm = f32 * (rows * 3 * inner * 2
                    + 3 * gblk * heads * N * dim_head
                    + 2 * gblk * heads * N * N
                    + gblk * heads * N * dim_head
                    + (heads + 1) * rows * D)
    io = 2 * 2 * rows * D * itemsize
    wbytes = 2 * ((w_qkv.size + w_out.size) * w_item + D * f32)
    vmem_limit = int(min(64 * 2**20, 2 * (interm + io + wbytes) + (4 << 20)))

    out = pl.pallas_call(
        kernel,
        out_shape=jax.ShapeDtypeStruct((G * N, D), x.dtype),
        grid_spec=pltpu.PrefetchScalarGridSpec(
            num_scalar_prefetch=0,
            grid=(steps,),
            in_specs=[
                pl.BlockSpec((rows, D), lambda g: (g, 0)),              # x rows (gblk groups)
                pl.BlockSpec((D, 3 * inner), lambda g: (0, 0)),         # W_qkv (VMEM resident)
                pl.BlockSpec((heads, dim_head, D), lambda g: (0, 0, 0)),  # W_out (resident)
                pl.BlockSpec((1, D), lambda g: (0, 0)),                 # b_out
            ],
            out_specs=pl.BlockSpec((rows, D), lambda g: (g, 0)),
        ),
        compiler_params=pltpu.CompilerParams(
            dimension_semantics=("parallel",),
            vmem_limit_bytes=vmem_limit,
        ),
        cost_estimate=cost,
    )(x2, w_qkv, w_out_h, b2)

    return out.reshape(B, P, N, D)


def reference_attention(x, w_qkv, w_out, b_out, *, heads, dim_head):
    B, P, N, D = x.shape
    inner = heads * dim_head
    hp = lax.Precision.HIGHEST
    qkv = jnp.einsum("bpnd,de->bpne", x, w_qkv, precision=hp)
    q, k, v = jnp.split(qkv, 3, axis=-1)

    def to_heads(t):
        return t.reshape(B, P, N, heads, dim_head).transpose(0, 1, 3, 2, 4)

    q, k, v = map(to_heads, (q, k, v))
    dots = jnp.einsum("bphnd,bphmd->bphnm", q, k, precision=hp) * (dim_head ** -0.5)
    attn = jax.nn.softmax(dots, axis=-1)
    o = jnp.einsum("bphnm,bphmd->bphnd", attn, v, precision=hp)
    o = o.transpose(0, 1, 3, 2, 4).reshape(B, P, N, inner)
    return jnp.einsum("bpni,id->bpnd", o, w_out, precision=hp) + b_out


if __name__ == "__main__":
    # Small shapes consistent with the module: batch=2, patches=4, seq=16, dim=32,
    # heads=4, dim_head=16 (project_out=True path, as with the module defaults).
    B, P, N, D = 2, 4, 16, 32
    heads, dim_head = 4, 16
    inner = heads * dim_head

    key = jax.random.PRNGKey(0)
    kx, kq, kw, kb = jax.random.split(key, 4)

    x = jax.random.normal(kx, (B, P, N, D), dtype=jnp.float32)
    # PyTorch Linear stores (out, in); we keep the transposed (in, out) layout so the
    # kernel computes x @ W directly. to_qkv has no bias (nn.Linear(bias=False)).
    w_qkv = jax.random.normal(kq, (D, 3 * inner), dtype=jnp.float32) * 0.05
    w_out = jax.random.normal(kw, (inner, D), dtype=jnp.float32) * 0.05
    b_out = jax.random.normal(kb, (D,), dtype=jnp.float32) * 0.05

    y = attention(x, w_qkv, w_out, b_out, heads=heads, dim_head=dim_head)
    y = jax.block_until_ready(y)

    y_ref = reference_attention(x, w_qkv, w_out, b_out, heads=heads, dim_head=dim_head)
    assert y.shape == (B, P, N, D)
    max_err = float(jnp.max(jnp.abs(y - y_ref)))
    # Tolerance covers the EUP approximate-reciprocal softmax normalization.
    assert jnp.allclose(y, y_ref, atol=2e-3, rtol=2e-3), f"mismatch vs reference: {max_err}"

    print("KERNEL_OK")
</pallas_src>

<mosaic_0001>
module attributes {stable_mosaic.version = 11 : i64} {
  func.func @_attention_kernel(%arg0: i32, %arg1: memref<64x32xf32, #tpu.memory_space<vmem>>, %arg2: memref<32x192xf32, #tpu.memory_space<vmem>>, %arg3: memref<4x16x32xf32, #tpu.memory_space<vmem>>, %arg4: memref<1x32xf32, #tpu.memory_space<vmem>>, %arg5: memref<64x32xf32, #tpu.memory_space<vmem>>) attributes {dimension_semantics = [#tpu.dimension_semantics<parallel>], iteration_bounds = array<i64: 2>, scalar_prefetch = 0 : i64, scratch_operands = 0 : i64, tpu.core_type = #tpu.core_type<tc>, window_params = [{transform_indices = @transform_0, window_bounds = array<i64: 64, 32>}, {pipeline_mode = #tpu.pipeline_mode<synchronous>, transform_indices = @transform_1, window_bounds = array<i64: 32, 192>}, {pipeline_mode = #tpu.pipeline_mode<synchronous>, transform_indices = @transform_2, window_bounds = array<i64: 4, 16, 32>}, {pipeline_mode = #tpu.pipeline_mode<synchronous>, transform_indices = @transform_3, window_bounds = array<i64: 1, 32>}, {transform_indices = @transform_4, window_bounds = array<i64: 64, 32>}]} {
    %c0 = arith.constant 0 : index
    %c0_0 = arith.constant 0 : index
    %0 = vector.load %arg1[%c0, %c0_0] : memref<64x32xf32, #tpu.memory_space<vmem>>, vector<64x32xf32>
    %c0_1 = arith.constant 0 : index
    %c0_2 = arith.constant 0 : index
    %1 = vector.load %arg2[%c0_1, %c0_2] : memref<32x192xf32, #tpu.memory_space<vmem>>, vector<32x192xf32>
    %cst = arith.constant dense<0.000000e+00> : vector<64x192xf32>
    %2 = tpu.matmul %0, %1, %cst {dimension_numbers = #tpu.dot_dimension_numbers<[1], [0], [0], [1], [0, 0, 1, 1], [], []>} : vector<64x32xf32>, vector<32x192xf32>, vector<64x192xf32> -> vector<64x192xf32>
    %3 = vector.extract_strided_slice %2 {offsets = [0, 0], sizes = [64, 16], strides = [1, 1]} : vector<64x192xf32> to vector<64x16xf32>
    %4 = vector.extract_strided_slice %2 {offsets = [0, 16], sizes = [64, 16], strides = [1, 1]} : vector<64x192xf32> to vector<64x16xf32>
    %5 = vector.extract_strided_slice %2 {offsets = [0, 32], sizes = [64, 16], strides = [1, 1]} : vector<64x192xf32> to vector<64x16xf32>
    %6 = vector.extract_strided_slice %2 {offsets = [0, 48], sizes = [64, 16], strides = [1, 1]} : vector<64x192xf32> to vector<64x16xf32>
    %7 = vector.shape_cast %3 : vector<64x16xf32> to vector<1x64x16xf32>
    %8 = vector.shape_cast %4 : vector<64x16xf32> to vector<1x64x16xf32>
    %9 = vector.shape_cast %5 : vector<64x16xf32> to vector<1x64x16xf32>
    %10 = vector.shape_cast %6 : vector<64x16xf32> to vector<1x64x16xf32>
    %11 = tpu.concatenate %7, %8, %9, %10 in 0 : vector<1x64x16xf32>, vector<1x64x16xf32>, vector<1x64x16xf32>, vector<1x64x16xf32> -> vector<4x64x16xf32>
    %12 = vector.shape_cast %11 : vector<4x64x16xf32> to vector<16x16x16xf32>
    %13 = vector.extract_strided_slice %2 {offsets = [0, 64], sizes = [64, 16], strides = [1, 1]} : vector<64x192xf32> to vector<64x16xf32>
    %14 = vector.extract_strided_slice %2 {offsets = [0, 80], sizes = [64, 16], strides = [1, 1]} : vector<64x192xf32> to vector<64x16xf32>
    %15 = vector.extract_strided_slice %2 {offsets = [0, 96], sizes = [64, 16], strides = [1, 1]} : vector<64x192xf32> to vector<64x16xf32>
    %16 = vector.extract_strided_slice %2 {offsets = [0, 112], sizes = [64, 16], strides = [1, 1]} : vector<64x192xf32> to vector<64x16xf32>
    %17 = vector.shape_cast %13 : vector<64x16xf32> to vector<1x64x16xf32>
    %18 = vector.shape_cast %14 : vector<64x16xf32> to vector<1x64x16xf32>
    %19 = vector.shape_cast %15 : vector<64x16xf32> to vector<1x64x16xf32>
    %20 = vector.shape_cast %16 : vector<64x16xf32> to vector<1x64x16xf32>
    %21 = tpu.concatenate %17, %18, %19, %20 in 0 : vector<1x64x16xf32>, vector<1x64x16xf32>, vector<1x64x16xf32>, vector<1x64x16xf32> -> vector<4x64x16xf32>
    %22 = vector.shape_cast %21 : vector<4x64x16xf32> to vector<16x16x16xf32>
    %23 = vector.extract_strided_slice %2 {offsets = [0, 128], sizes = [64, 16], strides = [1, 1]} : vector<64x192xf32> to vector<64x16xf32>
    %24 = vector.extract_strided_slice %2 {offsets = [0, 144], sizes = [64, 16], strides = [1, 1]} : vector<64x192xf32> to vector<64x16xf32>
    %25 = vector.extract_strided_slice %2 {offsets = [0, 160], sizes = [64, 16], strides = [1, 1]} : vector<64x192xf32> to vector<64x16xf32>
    %26 = vector.extract_strided_slice %2 {offsets = [0, 176], sizes = [64, 16], strides = [1, 1]} : vector<64x192xf32> to vector<64x16xf32>
    %27 = vector.shape_cast %23 : vector<64x16xf32> to vector<1x64x16xf32>
    %28 = vector.shape_cast %24 : vector<64x16xf32> to vector<1x64x16xf32>
    %29 = vector.shape_cast %25 : vector<64x16xf32> to vector<1x64x16xf32>
    %30 = vector.shape_cast %26 : vector<64x16xf32> to vector<1x64x16xf32>
    %31 = tpu.concatenate %27, %28, %29, %30 in 0 : vector<1x64x16xf32>, vector<1x64x16xf32>, vector<1x64x16xf32>, vector<1x64x16xf32> -> vector<4x64x16xf32>
    %32 = vector.shape_cast %31 : vector<4x64x16xf32> to vector<16x16x16xf32>
    "tpu.trace_start"() <{level = 10 : i32, message = "bqd,bkd->bqk"}> : () -> ()
    %cst_3 = arith.constant dense<0.000000e+00> : vector<16x16x16xf32>
    %33 = tpu.matmul %12, %22, %cst_3 {dimension_numbers = #tpu.dot_dimension_numbers<[2], [2], [1], [1], [0, 0, 0, 1, 1, 1], [0], [0]>} : vector<16x16x16xf32>, vector<16x16x16xf32>, vector<16x16x16xf32> -> vector<16x16x16xf32>
    "tpu.trace_stop"() : () -> ()
    %cst_4 = arith.constant 2.500000e-01 : f32
    %34 = vector.broadcast %cst_4 : f32 to vector<16x16x16xf32>
    %35 = arith.mulf %33, %34 : vector<16x16x16xf32>
    %cst_5 = arith.constant dense<0xFF800000> : vector<16x16xf32>
    %36 = vector.multi_reduction <maximumf>, %35, %cst_5 [2] : vector<16x16x16xf32> to vector<16x16xf32>
    %37 = vector.shape_cast %36 : vector<16x16xf32> to vector<16x16x1xf32>
    %38 = vector.broadcast %37 : vector<16x16x1xf32> to vector<16x16x16xf32>
    %39 = arith.subf %35, %38 : vector<16x16x16xf32>
    %40 = math.exp %39 : vector<16x16x16xf32>
    %cst_6 = arith.constant dense<0.000000e+00> : vector<16x16xf32>
    %41 = vector.multi_reduction <add>, %40, %cst_6 [2] : vector<16x16x16xf32> to vector<16x16xf32>
    %42 = vector.shape_cast %41 : vector<16x16xf32> to vector<16x16x1xf32>
    %43 = tpu.reciprocal %42 {approx = true} : vector<16x16x1xf32> -> vector<16x16x1xf32>
    %44 = vector.broadcast %43 : vector<16x16x1xf32> to vector<16x16x16xf32>
    %45 = arith.mulf %40, %44 : vector<16x16x16xf32>
    "tpu.trace_start"() <{level = 10 : i32, message = "bqk,bkd->bqd"}> : () -> ()
    %cst_7 = arith.constant dense<0.000000e+00> : vector<16x16x16xf32>
    %46 = tpu.matmul %45, %32, %cst_7 {dimension_numbers = #tpu.dot_dimension_numbers<[2], [1], [1], [2], [0, 0, 0, 1, 1, 2], [0], [0]>} : vector<16x16x16xf32>, vector<16x16x16xf32>, vector<16x16x16xf32> -> vector<16x16x16xf32>
    "tpu.trace_stop"() : () -> ()
    %47 = vector.shape_cast %46 : vector<16x16x16xf32> to vector<4x64x16xf32>
    %c0_8 = arith.constant 0 : index
    %c0_9 = arith.constant 0 : index
    %c0_10 = arith.constant 0 : index
    %48 = vector.load %arg3[%c0_8, %c0_9, %c0_10] : memref<4x16x32xf32, #tpu.memory_space<vmem>>, vector<4x16x32xf32>
    "tpu.trace_start"() <{level = 10 : i32, message = "hrd,hde->hre"}> : () -> ()
    %cst_11 = arith.constant dense<0.000000e+00> : vector<4x64x32xf32>
    %49 = tpu.matmul %47, %48, %cst_11 {dimension_numbers = #tpu.dot_dimension_numbers<[2], [1], [1], [2], [0, 0, 0, 1, 1, 2], [0], [0]>} : vector<4x64x16xf32>, vector<4x16x32xf32>, vector<4x64x32xf32> -> vector<4x64x32xf32>
    "tpu.trace_stop"() : () -> ()
    %cst_12 = arith.constant dense<0.000000e+00> : vector<64x32xf32>
    %50 = vector.multi_reduction <add>, %49, %cst_12 [0] : vector<4x64x32xf32> to vector<64x32xf32>
    %c0_13 = arith.constant 0 : index
    %c0_14 = arith.constant 0 : index
    %51 = vector.load %arg4[%c0_13, %c0_14] : memref<1x32xf32, #tpu.memory_space<vmem>>, vector<1x32xf32>
    %52 = vector.broadcast %51 : vector<1x32xf32> to vector<64x32xf32>
    %53 = arith.addf %50, %52 : vector<64x32xf32>
    %c0_15 = arith.constant 0 : index
    %c0_16 = arith.constant 0 : index
    %54 = vector.load %arg5[%c0_15, %c0_16] : memref<64x32xf32, #tpu.memory_space<vmem>>, vector<64x32xf32>
    tpu.vector_store %arg5[%c0_15, %c0_16], %53 {strides = array<i32>} : memref<64x32xf32, #tpu.memory_space<vmem>>, vector<64x32xf32>,
    return
  }
  func.func @transform_0(%arg0: i32) -> (i32, i32) {
    %c0_i32 = arith.constant 0 : i32
    %c0_i32_0 = arith.constant 0 : i32
    return %arg0, %c0_i32 : i32, i32
  }
  func.func @transform_1(%arg0: i32) -> (i32, i32) {
    %c0_i32 = arith.constant 0 : i32
    %c0_i32_0 = arith.constant 0 : i32
    %c0_i32_1 = arith.constant 0 : i32
    return %c0_i32, %c0_i32_0 : i32, i32
  }
  func.func @transform_2(%arg0: i32) -> (i32, i32, i32) {
    %c0_i32 = arith.constant 0 : i32
    %c0_i32_0 = arith.constant 0 : i32
    %c0_i32_1 = arith.constant 0 : i32
    %c0_i32_2 = arith.constant 0 : i32
    return %c0_i32, %c0_i32_0, %c0_i32_1 : i32, i32, i32
  }
  func.func @transform_3(%arg0: i32) -> (i32, i32) {
    %c0_i32 = arith.constant 0 : i32
    %c0_i32_0 = arith.constant 0 : i32
    %c0_i32_1 = arith.constant 0 : i32
    return %c0_i32, %c0_i32_0 : i32, i32
  }
  func.func @transform_4(%arg0: i32) -> (i32, i32) {
    %c0_i32 = arith.constant 0 : i32
    %c0_i32_0 = arith.constant 0 : i32
    return %arg0, %c0_i32 : i32, i32
  }
}

</mosaic_0001>

<bundles_post_ra>
// kernel: tpu_custom_call.1
= control target key start
LH: loop header
LB: loop body
LE: loop exit
PB: predicated region body
PF: predicated region fallthrough
CT: control target
= control target key end

     0   :  { %s5330_s15 = smov 0   ;;  %s6222_s0 = inlined_call_operand.vmem [shape: f32[128,32], index: 0, kind: input, shape index: {}]   ;;  %s6223_s1 = inlined_call_operand.vmem [shape: f32[32,192], index: 1, kind: input, shape index: {}]   ;;  %s6224_s2 = inlined_call_operand.vmem [shape: f32[4,16,32], index: 2, kind: input, shape index: {}]   ;;  %s6225_s3 = inlined_call_operand.vmem [shape: f32[1,32], index: 3, kind: input, shape index: {}]   ;;  %s6226_s4 = inlined_call_operand.vmem [shape: f32[128,32], index: 4, kind: output, shape index: {}]  }
   0x1 LB: > { %s4223_s16 = sadd.s32 4294967295, %s5298_s15   ;;  %p4227_p0 = scmp.ge.s32.totalorder %s5298_s15, 1  ;;  %s5298_s15 = sphi %s5330_s15, %s14_s15  }
   0x2   : > { %p163_p1 = scmp.lt.s32.totalorder %s5298_s15, 3 }
   0x4   : > { %p164_p2 = pnand %p4227_p0, %p163_p1 }
   0x5   : > { %v210_v0 = vld [vmem:[%s6223_s1 + $0x8] sm:$0xff] (!%p164_p2)  ;;  %v212_v1 = vld [vmem:[%s6223_s1 + $0x18] sm:$0xff] (!%p164_p2)  ;;  %v209_v2 = vld [vmem:[%s6223_s1] sm:$0xff] (!%p164_p2)  ;;  %s4228_s23 = sshll.u32 (!%p164_p2), %s4223_s16, 3  ;;  %v5300_v7 = vmov (!%p164_p2), 0.0   ;;  %vm217_vm0 = vcmask (!%p164_p2), 261120  }
   0x6   : > { %167 = sbr.rel (%p164_p2) target bundleno = 1537 (0x601), region = 36  ;;  %v4827_v3 = vpack.c.bf16 (!%p164_p2), %v212_v1, %v210_v0  ;;  %v211_v4 = vld [vmem:[%s6223_s1 + $0x10] sm:$0xff] (!%p164_p2)  ;;  %v214_v5 = vld [vmem:[%s6223_s1 + $0x28] sm:$0xff] (!%p164_p2)  ;;  %v216_v6 = vld [vmem:[%s6223_s1 + $0x38] sm:$0xff] (!%p164_p2)  ;;  %306 = vmatprep.mubr.f32.mxu0 (!%p164_p2), %v5300_v7  ;;  %p190_p3 = scmp.lt.s32.totalorder (!%p164_p2), %s4228_s23, 15  ;;  %vm495_vm1 = vcmask (!%p164_p2), 130048  }
   0x7   : > { %v4829_v8 = vpack.c.bf16 (!%p164_p2), %v211_v4, %v209_v2  ;;  %v4831_v9 = vpack.c.bf16 (!%p164_p2), %v216_v6, %v214_v5  ;;  %v213_v10 = vld [vmem:[%s6223_s1 + $0x20] sm:$0xff] (!%p164_p2)  ;;  %v215_v11 = vld [vmem:[%s6223_s1 + $0x30] sm:$0xff] (!%p164_p2)  ;;  %s5301_s12 = smov (!%p164_p2), 112   ;;  %s5302_s13 = smov (!%p164_p2), 96   ;;  %vm5518_vm2 = vmpackc.low (!%p164_p2), %vm495_vm1, %vm495_vm1 }
   0x8   : > { %4828 = vmatprep.subr.bf16.mxu0 (!%p164_p2), %v4827_v3  ;;  %v4833_v12 = vpack.c.bf16 (!%p164_p2), %v215_v11, %v213_v10  ;;  %s5303_s14 = smov (!%p164_p2), 64   ;;  %s5304_s16 = smov (!%p164_p2), 80  }
   0x9   : > { %4830 = vmatpush1.bf16.msra.mxu0 (!%p164_p2), %v4829_v8 }
   0xa   : > { %4832 = vmatprep.subr.bf16.mxu0 (!%p164_p2), %v4831_v9 }
   0xd   : > { %s6230_s23 = smov (!%p190_p3, %s4228_s23), 15  ;;  %4834 = vmatpush1.bf16.msra.mxu0 %v4833_v12 }
   0xe   : > { %s4229_s8 = sshll.u32 %s6230_s23, 3 }
   0xf   : > { %s193_s11 = scalar_lea.vmem %s6222_s0, %s4229_s8 }
  0x10   : > { %v201_v13 = vld [vmem:[%s193_s11] sm:$0xff]  ;;  %v202_v14 = vld [vmem:[%s193_s11 + $0x8] sm:$0xff]  ;;  %v203_v15 = vld [vmem:[%s193_s11 + $0x10] sm:$0xff] }
  0x11   : > { %4232 = vmatmul.mubr.msk.f32.vlgmr.msra.gmra.mrb[0].mxu0 %vm217_vm0, %v201_v13  ;;  %v204_v16 = vld [vmem:[%s193_s11 + $0x18] sm:$0xff]  ;;  %v205_v17 = vld [vmem:[%s193_s11 + $0x20] sm:$0xff]  ;;  %v206_v18 = vld [vmem:[%s193_s11 + $0x28] sm:$0xff] }
  0x12   : > { %312 = vmatprep.mubr.f32.mxu0 %v5300_v7  ;;  %v207_v19 = vld [vmem:[%s193_s11 + $0x30] sm:$0xff]  ;;  %v208_v20 = vld [vmem:[%s193_s11 + $0x38] sm:$0xff] }
  0x15   : > { %4233 = vmatmul.mubr.msk.f32.gmra.mrb[2].mxu0 %vm217_vm0, %v202_v14 }
  0x16   : > { %318 = vmatprep.mubr.f32.mxu0 %v5300_v7 }
  0x19   : > { %4234 = vmatmul.mubr.msk.f32.gmra.mrb[4].mxu0 %vm217_vm0, %v203_v15 }
  0x1a   : > { %324 = vmatprep.mubr.f32.mxu0 %v5300_v7 }
  0x1d   : > { %4235 = vmatmul.mubr.msk.f32.gmra.mrb[6].mxu0 %vm217_vm0, %v204_v16 }
  0x1e   : > { %330 = vmatprep.mubr.f32.mxu0 %v5300_v7 }
  0x21   : > { %4236 = vmatmul.mubr.msk.f32.gmra.mrb[8].mxu0 %vm217_vm0, %v205_v17 }
  0x22   : > { %336 = vmatprep.mubr.f32.mxu0 %v5300_v7 }
  0x25   : > { %4237 = vmatmul.mubr.msk.f32.gmra.mrb[10].mxu0 %vm217_vm0, %v206_v18 }
  0x26   : > { %342 = vmatprep.mubr.f32.mxu0 %v5300_v7 }
  0x29   : > { %4238 = vmatmul.mubr.msk.f32.gmra.mrb[12].mxu0 %vm217_vm0, %v207_v19 }
  0x2a   : > { %348 = vmatprep.mubr.f32.mxu0 %v5300_v7 }
  0x2d   : > { %4239 = vmatmul.mubr.msk.f32.gmra.mrb[14].mxu0 %vm217_vm0, %v208_v20 }
  0xe4   : > { %v308_v21 = vpop.f32.mrb[0].mxu0 }
  0xe5   : > { %363 = vrot.lane.b32.xlu0 %v308_v21, %s5301_s12  ;;  %v310_v22 = vpop.f32.mrb[1].mxu0  ;;  %4543 = vmatprep.mubr.msk.f32.mxu1 %vm495_vm1, %v308_v21 }
  0xe8   : > { %v5380_v23 = vpop.f32.mrb[2].mxu0 }
  0xe9   : > { %381 = vrot.lane.b32.xlu1 %v5380_v23, %s5302_s13  ;;  %365 = vrot.lane.b32.xlu0 %v5380_v23, %s5301_s12  ;;  %v316_v24 = vpop.f32.mrb[3].mxu0  ;;  %v5024_v25 = vpack.i.bf16 %v5380_v23, %v308_v21 }
  0xea   : > { %v5387_v26 = vpack.i.bf16 %v316_v24, %v310_v22  ;;  %v5389_v27 = vpack.c.bf16 %v316_v24, %v310_v22 }
  0xec   : > { %v5391_v28 = vpop.f32.mrb[4].mxu0 }
  0xed   : > { %379 = vrot.lane.b32.xlu0 %v308_v21, %s5302_s13  ;;  %367 = vrot.lane.b32.xlu1 %v5391_v28, %s5301_s12  ;;  %v322_v29 = vpop.f32.mrb[5].mxu0 }
  0xf0   : > { %v5396_v30 = vpop.f32.mrb[6].mxu0 }
  0xf1   : > { %369 = vrot.lane.b32.xlu1 %v5396_v30, %s5301_s12  ;;  %v328_v31 = vpop.f32.mrb[7].mxu0  ;;  %v5029_v32 = vpack.i.bf16 %v5396_v30, %v5391_v28 }
  0xf2   : > { %v5402_v33 = vpack.i.bf16 %v328_v31, %v322_v29  ;;  %v5404_v34 = vpack.c.bf16 %v328_v31, %v322_v29 }
  0xf4   : > { %v5406_v35 = vpop.f32.mrb[8].mxu0 }
  0xf5   : > { %371 = vrot.lane.b32.xlu0 %v5406_v35, %s5301_s12  ;;  %v334_v36 = vpop.f32.mrb[9].mxu0 }
  0xf8   : > { %v5410_v37 = vpop.f32.mrb[10].mxu0 }
  0xf9   : > { %373 = vrot.lane.b32.xlu1 %v5410_v37, %s5301_s12  ;;  %v340_v38 = vpop.f32.mrb[11].mxu0  ;;  %v5034_v39 = vpack.i.bf16 %v5410_v37, %v5406_v35 }
  0xfa   : > { %v5416_v40 = vpack.i.bf16 %v340_v38, %v334_v36  ;;  %v5418_v41 = vpack.c.bf16 %v340_v38, %v334_v36 }
  0xfc   : > { %v5420_v42 = vpop.f32.mrb[12].mxu0 }
  0xfd   : > { %375 = vrot.lane.b32.xlu0 %v5420_v42, %s5301_s12  ;;  %v346_v43 = vpop.f32.mrb[13].mxu0 }
 0x100   : > { %v5424_v44 = vpop.f32.mrb[14].mxu0 }
 0x101   : > { %383 = vrot.lane.b32.xlu0 %v5391_v28, %s5302_s13  ;;  %377 = vrot.lane.b32.xlu1 %v5424_v44, %s5301_s12  ;;  %v352_v45 = vpop.f32.mrb[15].mxu0  ;;  %v5039_v46 = vpack.i.bf16 %v5424_v44, %v5420_v42 }
 0x102   : > { %v5432_v47 = vpack.i.bf16 %v352_v45, %v346_v43  ;;  %v5434_v48 = vpack.c.bf16 %v352_v45, %v346_v43 }
 0x105   : > { %387 = vrot.lane.b32.xlu0 %v5406_v35, %s5302_s13  ;;  %385 = vrot.lane.b32.xlu1 %v5396_v30, %s5302_s13 }
 0x109   : > { %391 = vrot.lane.b32.xlu0 %v5420_v42, %s5302_s13  ;;  %389 = vrot.lane.b32.xlu1 %v5410_v37, %s5302_s13 }
 0x10d   : > { %5025 = vrot.lane.b32.xlu0 %v5024_v25, %s5303_s14  ;;  %395 = vrot.lane.b32.xlu1 %v308_v21, %s5304_s16 }
 0x111   : > { %397 = vrot.lane.b32.xlu0 %v5380_v23, %s5304_s16  ;;  %393 = vrot.lane.b32.xlu1 %v5424_v44, %s5302_s13 }
 0x115   : > { %401 = vrot.lane.b32.xlu0 %v5396_v30, %s5304_s16  ;;  %399 = vrot.lane.b32.xlu1 %v5391_v28, %s5304_s16 }
 0x119   : > { %403 = vrot.lane.b32.xlu0 %v5406_v35, %s5304_s16  ;;  %5030 = vrot.lane.b32.xlu1 %v5029_v32, %s5303_s14 }
 0x11d   : > { %407 = vrot.lane.b32.xlu0 %v5420_v42, %s5304_s16  ;;  %405 = vrot.lane.b32.xlu1 %v5410_v37, %s5304_s16 }
 0x121   : > { %5035 = vrot.lane.b32.xlu0 %v5034_v39, %s5303_s14  ;;  %409 = vrot.lane.b32.xlu1 %v5424_v44, %s5304_s16 }
 0x125   : > { %5040 = vrot.lane.b32.xlu1 %v5039_v46, %s5303_s14 }
 0x157   : > { %v364_v49 = vpop.permute.xlu0 %363 }
 0x158   : > { %4571 = vmatprep.mubr.msk.f32.mxu0 %vm495_vm1, %v364_v49 }
 0x15b   : > { %v5466_v50 = vpop.permute.xlu1 %381  ;;  %v5468_v51 = vpop.permute.xlu0 %365 }
 0x15c   : > { %v5044_v52 = vpack.i.bf16 %v5468_v51, %v364_v49 }
 0x15e   : > { %5045 = vrot.lane.b32.xlu0 %v5044_v52, %s5303_s14 }
 0x15f   : > { %v5472_v53 = vpop.permute.xlu1 %367  ;;  %v5479_v56 = vpop.permute.xlu0 %379 }
 0x160   : > { %v5064_v61 = vpack.i.bf16 %v5466_v50, %v5479_v56 }
 0x163   : > { %v5474_v54 = vpop.permute.xlu1 %369 }
 0x164   : > { %v5049_v55 = vpack.i.bf16 %v5474_v54, %v5472_v53 }
 0x166   : > { %5050 = vrot.lane.b32.xlu1 %v5049_v55, %s5303_s14 }
 0x167   : > { %v5481_v57 = vpop.permute.xlu0 %371 }
 0x16b   : > { %v5483_v58 = vpop.permute.xlu1 %373 }
 0x16c   : > { %v5054_v59 = vpack.i.bf16 %v5483_v58, %v5481_v57 }
 0x16e   : > { %5055 = vrot.lane.b32.xlu0 %v5054_v59, %s5303_s14 }
 0x16f   : > { %v5488_v60 = vpop.permute.xlu0 %375 }
 0x172   : > { %5065 = vrot.lane.b32.xlu0 %v5064_v61, %s5303_s14 }
 0x173   : > { %v5493_v62 = vpop.permute.xlu0 %383  ;;  %v5495_v63 = vpop.permute.xlu1 %377 }
 0x174   : > { %v5059_v0 = vpack.i.bf16 %v5495_v63, %v5488_v60 }
 0x176   : > { %5060 = vrot.lane.b32.xlu1 %v5059_v0, %s5303_s14 }
 0x177   : > { %v5500_v1 = vpop.permute.xlu0 %387  ;;  %v5502_v2 = vpop.permute.xlu1 %385 }
 0x178   : > { %v5069_v3 = vpack.i.bf16 %v5502_v2, %v5493_v62 }
 0x17a   : > { %5070 = vrot.lane.b32.xlu1 %v5069_v3, %s5303_s14 }
 0x17b   : > { %v5507_v4 = vpop.permute.xlu0 %391  ;;  %v5509_v5 = vpop.permute.xlu1 %389 }
 0x17c   : > { %v5074_v6 = vpack.i.bf16 %v5509_v5, %v5500_v1 }
 0x17e   : > { %5075 = vrot.lane.b32.xlu0 %v5074_v6, %s5303_s14 }
 0x17f   : > { %v5026_v7 = vpop.permute.xlu0 %5025  ;;  %v5514_v8 = vpop.permute.xlu1 %395 }
 0x180   : > { %v5028_v9 = vunpack.i.h.bf16 %v5026_v7  ;;  %v5027_v10 = vunpack.i.l.bf16 %v5026_v7 }
 0x182   : > { %v4835_v12 = vpack.c.bf16 %v5028_v9, %v5027_v10 }
 0x183   : > { %v5522_v13 = vpop.permute.xlu0 %397  ;;  %v5524_v14 = vpop.permute.xlu1 %393 }
 0x184   : > { %v5084_v15 = vpack.i.bf16 %v5522_v13, %v5514_v8  ;;  %v5079_v16 = vpack.i.bf16 %v5524_v14, %v5507_v4  ;;  %4837 = vmatprep.subr.msk.bf16.mxu1 %vm5518_vm2, %v4835_v12 }
 0x185   : > { %4840 = vmatpush3.bf16.xpose.msk.msra.mxu1 %vm5518_vm2, %v4835_v12 }
 0x186   : > { %5085 = vrot.lane.b32.xlu0 %v5084_v15, %s5303_s14  ;;  %5080 = vrot.lane.b32.xlu1 %v5079_v16, %s5303_s14 }
 0x187   : > { %v5536_v17 = vpop.permute.xlu0 %401  ;;  %v5538_v18 = vpop.permute.xlu1 %399 }
 0x188   : > { %v5089_v19 = vpack.i.bf16 %v5536_v17, %v5538_v18 }
 0x18a   : > { %5090 = vrot.lane.b32.xlu1 %v5089_v19, %s5303_s14 }
 0x18b   : > { %v5543_v20 = vpop.permute.xlu0 %403  ;;  %v5031_v21 = vpop.permute.xlu1 %5030 }
 0x18c   : > { %v5033_v22 = vunpack.i.h.bf16 %v5031_v21  ;;  %v5032_v24 = vunpack.i.l.bf16 %v5031_v21  ;;  %4544 = vmatmul.mubr.msk.f32.vlgmr.msra.gmra.mrb[0].mxu1 %vm495_vm1, %v5380_v23 }
 0x18d   : > { %4550 = vmatprep.mubr.msk.f32.mxu1 %vm495_vm1, %v5391_v28 }
 0x18e   : > { %v4841_v25 = vpack.c.bf16 %v5033_v22, %v5032_v24 }
 0x18f   : > { %v5549_v29 = vpop.permute.xlu0 %407  ;;  %v5551_v31 = vpop.permute.xlu1 %405 }
 0x190   : > { %v5094_v32 = vpack.i.bf16 %v5551_v31, %v5543_v20  ;;  %4843 = vmatprep.subr.msk.bf16.mxu1 %vm5518_vm2, %v4841_v25 }
 0x191   : > { %4846 = vmatpush3.bf16.xpose.msk.msra.mxu1 %vm5518_vm2, %v4841_v25 }
 0x192   : > { %5095 = vrot.lane.b32.xlu0 %v5094_v32, %s5303_s14 }
 0x193   : > { %v5036_v23 = vpop.permute.xlu0 %5035  ;;  %v5560_v36 = vpop.permute.xlu1 %409 }
 0x194   : > { %v5038_v28 = vunpack.i.h.bf16 %v5036_v23  ;;  %v5037_v38 = vunpack.i.l.bf16 %v5036_v23  ;;  %v5099_v39 = vpack.i.bf16 %v5560_v36, %v5549_v29 }
 0x196   : > { %v4847_v43 = vpack.c.bf16 %v5038_v28, %v5037_v38  ;;  %5110 = vrot.lane.b32.xlu0 %v5402_v33, %s5301_s12  ;;  %5100 = vrot.lane.b32.xlu1 %v5099_v39, %s5303_s14 }
 0x197   : > { %v5041_v45 = vpop.permute.xlu1 %5040 }
 0x198   : > { %v5043_v46 = vunpack.i.h.bf16 %v5041_v45  ;;  %v5042_v49 = vunpack.i.l.bf16 %v5041_v45  ;;  %4551 = vmatmul.mubr.msk.f32.vlgmr.msra.gmra.mrb[2].mxu1 %vm495_vm1, %v5396_v30  ;;  %4849 = vmatprep.subr.msk.bf16.mxu1 %vm5518_vm2, %v4847_v43 }
 0x199   : > { %4852 = vmatpush3.bf16.xpose.msk.msra.mxu1 %vm5518_vm2, %v4847_v43  ;;  %4557 = vmatprep.mubr.msk.f32.mxu1 %vm495_vm1, %v5406_v35 }
 0x19a   : > { %v4853_v52 = vpack.c.bf16 %v5043_v46, %v5042_v49  ;;  %5125 = vrot.lane.b32.xlu0 %v5387_v26, %s5302_s13  ;;  %5105 = vrot.lane.b32.xlu1 %v5387_v26, %s5301_s12 }
 0x19c   : > { %4855 = vmatprep.subr.msk.bf16.mxu1 %vm5518_vm2, %v4853_v52 }
 0x19e   : > { %5115 = vrot.lane.b32.xlu1 %v5416_v40, %s5301_s12 }
 0x1a0   : > { %4558 = vmatmul.mubr.msk.f32.vlgmr.msra.gmra.mrb[4].mxu1 %vm495_vm1, %v5410_v37 }
 0x1a1   : > { %4858 = vmatpush3.bf16.xpose.msk.msra.mxu1 %vm5518_vm2, %v4853_v52  ;;  %4564 = vmatprep.mubr.msk.f32.mxu1 %vm495_vm1, %v5420_v42 }
 0x1a2   : > { %5120 = vrot.lane.b32.xlu1 %v5432_v47, %s5301_s12 }
 0x1a6   : > { %5130 = vrot.lane.b32.xlu1 %v5402_v33, %s5302_s13 }
 0x1a8   : > { %4565 = vmatmul.mubr.msk.f32.vlgmr.msra.gmra.mrb[6].mxu1 %vm495_vm1, %v5424_v44 }
 0x1a9   : > { %4578 = vmatprep.mubr.msk.f32.mxu1 %vm495_vm1, %v5472_v53 }
 0x1aa   : > { %5135 = vrot.lane.b32.xlu1 %v5416_v40, %s5302_s13 }
 0x1ae   : > { %5140 = vrot.lane.b32.xlu1 %v5432_v47, %s5302_s13  ;;  %s6195_s13 = scalar_lea.vmem %s6226_s4, %s4229_s8 }
 0x1d0   : > { %v5046_v30 = vpop.permute.xlu0 %5045 }
 0x1d1   : > { %v5048_v35 = vunpack.i.h.bf16 %v5046_v30  ;;  %v5047_v37 = vunpack.i.l.bf16 %v5046_v30 }
 0x1d3   : > { %v4859_v42 = vpack.c.bf16 %v5048_v35, %v5047_v37 }
 0x1d5   : > { %4861 = vmatprep.subr.msk.bf16.mxu0 %vm5518_vm2, %v4859_v42 }
 0x1d6   : > { %4864 = vmatpush3.bf16.xpose.msk.msra.mxu0 %vm5518_vm2, %v4859_v42 }
 0x1d8   : > { %v5051_v44 = vpop.permute.xlu1 %5050 }
 0x1d9   : > { %v5053_v55 = vunpack.i.h.bf16 %v5051_v44  ;;  %v5052_v59 = vunpack.i.l.bf16 %v5051_v44 }
 0x1db   : > { %v4865_v53 = vpack.c.bf16 %v5053_v55, %v5052_v59 }
 0x1dd   : > { %4572 = vmatmul.mubr.msk.f32.vlgmr.msra.gmra.mrb[16].mxu0 %vm495_vm1, %v5468_v51  ;;  %4867 = vmatprep.subr.msk.bf16.mxu1 %vm5518_vm2, %v4865_v53 }
 0x1de   : > { %4870 = vmatpush3.bf16.xpose.msk.msra.mxu1 %vm5518_vm2, %v4865_v53  ;;  %4585 = vmatprep.mubr.msk.f32.mxu0 %vm495_vm1, %v5481_v57 }
 0x1e0   : > { %v5056_v61 = vpop.permute.xlu0 %5055 }
 0x1e1   : > { %v5058_v0 = vunpack.i.h.bf16 %v5056_v61  ;;  %v5057_v3 = vunpack.i.l.bf16 %v5056_v61 }
 0x1e3   : > { %v4871_v6 = vpack.c.bf16 %v5058_v0, %v5057_v3 }
 0x1e4   : > { %v5066_v7 = vpop.permute.xlu0 %5065 }
 0x1e5   : > { %v5068_v9 = vunpack.i.h.bf16 %v5066_v7  ;;  %v5067_v10 = vunpack.i.l.bf16 %v5066_v7  ;;  %4579 = vmatmul.mubr.msk.f32.vlgmr.msra.gmra.mrb[8].mxu1 %vm495_vm1, %v5474_v54  ;;  %4873 = vmatprep.subr.msk.bf16.mxu0 %vm5518_vm2, %v4871_v6 }
 0x1e6   : > { %4876 = vmatpush3.bf16.xpose.msk.msra.mxu0 %vm5518_vm2, %v4871_v6  ;;  %4592 = vmatprep.mubr.msk.f32.mxu1 %vm495_vm1, %v5488_v60 }
 0x1e7   : > { %v4883_v51 = vpack.c.bf16 %v5068_v9, %v5067_v10 }
 0x1e8   : > { %v5061_v57 = vpop.permute.xlu1 %5060 }
 0x1e9   : > { %v5063_v12 = vunpack.i.h.bf16 %v5061_v57  ;;  %v5062_v15 = vunpack.i.l.bf16 %v5061_v57  ;;  %4885 = vmatprep.subr.msk.bf16.mxu0 %vm5518_vm2, %v4883_v51 }
 0x1eb   : > { %v4877_v16 = vpack.c.bf16 %v5063_v12, %v5062_v15 }
 0x1ec   : > { %v5071_v19 = vpop.permute.xlu1 %5070 }
 0x1ed   : > { %v5073_v21 = vunpack.i.h.bf16 %v5071_v19  ;;  %v5072_v54 = vunpack.i.l.bf16 %v5071_v19  ;;  %4586 = vmatmul.mubr.msk.f32.vlgmr.msra.gmra.mrb[18].mxu0 %vm495_vm1, %v5483_v58  ;;  %4879 = vmatprep.subr.msk.bf16.mxu1 %vm5518_vm2, %v4877_v16 }
 0x1ee   : > { %4882 = vmatpush3.bf16.xpose.msk.msra.mxu1 %vm5518_vm2, %v4877_v16  ;;  %4888 = vmatpush3.bf16.xpose.msk.msra.mxu0 %vm5518_vm2, %v4883_v51 }
 0x1ef   : > { %v4889_v60 = vpack.c.bf16 %v5073_v21, %v5072_v54  ;;  %4599 = vmatprep.mubr.msk.f32.mxu0 %vm495_vm1, %v5479_v56 }
 0x1f0   : > { %v5076_v22 = vpop.permute.xlu0 %5075 }
 0x1f1   : > { %v5078_v24 = vunpack.i.h.bf16 %v5076_v22  ;;  %v5077_v25 = vunpack.i.l.bf16 %v5076_v22  ;;  %4891 = vmatprep.subr.msk.bf16.mxu1 %vm5518_vm2, %v4889_v60 }
 0x1f3   : > { %v4895_v58 = vpack.c.bf16 %v5078_v24, %v5077_v25 }
 0x1f5   : > { %4593 = vmatmul.mubr.msk.f32.vlgmr.msra.gmra.mrb[10].mxu1 %vm495_vm1, %v5495_v63  ;;  %4600 = vmatmul.mubr.msk.f32.vlgmr.msra.gmra.mrb[20].mxu0 %vm495_vm1, %v5466_v50 }
 0x1f6   : > { %4897 = vmatprep.subr.msk.bf16.mxu0 %vm5518_vm2, %v4895_v58  ;;  %4894 = vmatpush3.bf16.xpose.msk.msra.mxu1 %vm5518_vm2, %v4889_v60 }
 0x1f7   : > { %4606 = vmatprep.mubr.msk.f32.mxu1 %vm495_vm1, %v5493_v62  ;;  %4900 = vmatpush3.bf16.xpose.msk.msra.mxu0 %vm5518_vm2, %v4895_v58 }
 0x1f8   : > { %4613 = vmatprep.mubr.msk.f32.mxu0 %vm495_vm1, %v5500_v1  ;;  %v5086_v56 = vpop.permute.xlu0 %5085  ;;  %v5081_v63 = vpop.permute.xlu1 %5080 }
 0x1f9   : > { %v5088_v32 = vunpack.i.h.bf16 %v5086_v56  ;;  %v5087_v23 = vunpack.i.l.bf16 %v5086_v56  ;;  %v5083_v50 = vunpack.i.h.bf16 %v5081_v63  ;;  %v5082_v28 = vunpack.i.l.bf16 %v5081_v63 }
 0x1fb   : > { %v4907_v38 = vpack.c.bf16 %v5088_v32, %v5087_v23  ;;  %v4901_v39 = vpack.c.bf16 %v5083_v50, %v5082_v28 }
 0x1fc   : > { %v5091_v43 = vpop.permute.xlu1 %5090 }
 0x1fd   : > { %v5093_v45 = vunpack.i.h.bf16 %v5091_v43  ;;  %v5092_v46 = vunpack.i.l.bf16 %v5091_v43  ;;  %4607 = vmatmul.mubr.msk.f32.vlgmr.msra.gmra.mrb[12].mxu1 %vm495_vm1, %v5502_v2  ;;  %4903 = vmatprep.subr.msk.bf16.mxu1 %vm5518_vm2, %v4901_v39 }
 0x1fe   : > { %4614 = vmatmul.mubr.msk.f32.vlgmr.msra.gmra.mrb[22].mxu0 %vm495_vm1, %v5509_v5  ;;  %4909 = vmatprep.subr.msk.bf16.mxu0 %vm5518_vm2, %v4907_v38 }
 0x1ff   : > { %v4913_v62 = vpack.c.bf16 %v5093_v45, %v5092_v46  ;;  %4906 = vmatpush3.bf16.xpose.msk.msra.mxu1 %vm5518_vm2, %v4901_v39  ;;  %4620 = vmatprep.mubr.msk.f32.mxu1 %vm495_vm1, %v5507_v4 }
 0x200   : > { %4912 = vmatpush3.bf16.xpose.msk.msra.mxu0 %vm5518_vm2, %v4907_v38  ;;  %4627 = vmatprep.mubr.msk.f32.mxu0 %vm495_vm1, %v5514_v8 }
 0x201   : > { %4915 = vmatprep.subr.msk.bf16.mxu1 %vm5518_vm2, %v4913_v62 }
 0x204   : > { %v5096_v1 = vpop.permute.xlu0 %5095 }
 0x205   : > { %v5098_v2 = vunpack.i.h.bf16 %v5096_v1  ;;  %v5097_v5 = vunpack.i.l.bf16 %v5096_v1 }
 0x206   : > { %4621 = vmatmul.mubr.msk.f32.vlgmr.msra.gmra.mrb[14].mxu1 %vm495_vm1, %v5524_v14 }
 0x207   : > { %v4919_v49 = vpack.c.bf16 %v5098_v2, %v5097_v5  ;;  %4628 = vmatmul.mubr.msk.f32.vlgmr.msra.gmra.mrb[24].mxu0 %vm495_vm1, %v5522_v13  ;;  %4918 = vmatpush3.bf16.xpose.msk.msra.mxu1 %vm5518_vm2, %v4913_v62 }
 0x208   : > { %4634 = vmatprep.mubr.msk.f32.mxu1 %vm495_vm1, %v5538_v18  ;;  %4641 = vmatprep.mubr.msk.f32.mxu0 %vm495_vm1, %v5543_v20  ;;  %v5101_v4 = vpop.permute.xlu1 %5100 }
 0x209   : > { %v5103_v8 = vunpack.i.h.bf16 %v5101_v4  ;;  %v5102_v52 = vunpack.i.l.bf16 %v5101_v4  ;;  %4921 = vmatprep.subr.msk.bf16.mxu0 %vm5518_vm2, %v4919_v49 }
 0x20a   : > { %4924 = vmatpush3.bf16.xpose.msk.msra.mxu0 %vm5518_vm2, %v4919_v49 }
 0x20b   : > { %v4925_v14 = vpack.c.bf16 %v5103_v8, %v5102_v52  ;;  %4932 = vmatprep.subr.bf16.mxu0 %v5389_v27 }
 0x20c   : > { %v5767_v5 = vpop.permute.xlu1 %5105 }
 0x20d   : > { %4927 = vmatprep.subr.msk.bf16.mxu1 %vm5518_vm2, %v4925_v14 }
 0x20e   : > { %4635 = vmatmul.mubr.msk.f32.vlgmr.msra.gmra.mrb[16].mxu1 %vm495_vm1, %v5536_v17 }
 0x20f   : > { %4930 = vmatpush3.bf16.xpose.msk.msra.mxu1 %vm5518_vm2, %v4925_v14  ;;  %4648 = vmatprep.mubr.msk.f32.mxu1 %vm495_vm1, %v5549_v29 }
 0x210   : > { %4936 = vmatprep.subr.bf16.mxu1 %v5404_v34 }
 0x211   : > { %4642 = vmatmul.mubr.msk.f32.vlgmr.msra.gmra.mrb[26].mxu0 %vm495_vm1, %v5551_v31 }
 0x212   : > { %4934 = vmatpush3.bf16.msra.mxu0 %v5389_v27 }
 0x213   : > { %4940 = vmatprep.subr.bf16.mxu0 %v5418_v41 }
 0x216   : > { %4649 = vmatmul.mubr.msk.f32.vlgmr.msra.gmra.mrb[18].mxu1 %vm495_vm1, %v5560_v36 }
 0x217   : > { %4938 = vmatpush3.bf16.msra.mxu1 %v5404_v34 }
 0x218   : > { %4944 = vmatprep.subr.bf16.mxu1 %v5434_v48 }
 0x25f   : > { %v4545_v11 = vpop.f32.mrb[0].mxu1 }
 0x260   : > { %v5699_v13 = vmul.f32 0.25, %v4545_v11  ;;  %v570_v17 = vpop.f32.mrb[1].mxu1 }
 0x261   : > { %v5701_v18 = vmul.f32 0.25, %v570_v17 }
 0x262   : > { %v1919_v20 = vsel %vm495_vm1, %v5699_v13, -inf }
 0x263   : > { %1920 = vmax.xlane.f32.xlu1 %v1919_v20  ;;  %v1916_v27 = vsel %vm495_vm1, %v5701_v18, -inf }
 0x264   : > { %1917 = vmax.xlane.f32.xlu0 %v1916_v27  ;;  %v5777_v27 = vpop.permute.xlu1 %5115 }
 0x26b   : > { %v4552_v29 = vpop.f32.mrb[2].mxu1 }
 0x26c   : > { %v5707_v31 = vmul.f32 0.25, %v4552_v29  ;;  %v657_v34 = vpop.f32.mrb[3].mxu1 }
 0x26d   : > { %v5709_v36 = vmul.f32 0.25, %v657_v34 }
 0x26e   : > { %v1925_v30 = vsel %vm495_vm1, %v5707_v31, -inf }
 0x26f   : > { %1926 = vmax.xlane.f32.xlu1 %v1925_v30  ;;  %v1922_v35 = vsel %vm495_vm1, %v5709_v36, -inf }
 0x270   : > { %1923 = vmax.xlane.f32.xlu0 %v1922_v35 }
 0x273   : > { %v4559_v37 = vpop.f32.mrb[4].mxu1 }
 0x274   : > { %v5715_v42 = vmul.f32 0.25, %v4559_v37  ;;  %v744_v44 = vpop.f32.mrb[5].mxu1 }
 0x275   : > { %v5717_v55 = vmul.f32 0.25, %v744_v44 }
 0x276   : > { %v1931_v59 = vsel %vm495_vm1, %v5715_v42, -inf }
 0x277   : > { %1932 = vmax.xlane.f32.xlu0 %v1931_v59  ;;  %v1928_v53 = vsel %vm495_vm1, %v5717_v55, -inf  ;;  %v5791_v59 = vpop.permute.xlu1 %5120 }
 0x27b   : > { %1929 = vmax.xlane.f32.xlu0 %v1928_v53  ;;  %v4566_v61 = vpop.f32.mrb[6].mxu1 }
 0x27c   : > { %v5723_v0 = vmul.f32 0.25, %v4566_v61  ;;  %v831_v3 = vpop.f32.mrb[7].mxu1 }
 0x27d   : > { %v5725_v6 = vmul.f32 0.25, %v831_v3 }
 0x27e   : > { %v1937_v7 = vsel %vm495_vm1, %v5723_v0, -inf }
 0x27f   : > { %1938 = vmax.xlane.f32.xlu1 %v1937_v7  ;;  %v1934_v9 = vsel %vm495_vm1, %v5725_v6, -inf }
 0x283   : > { %1935 = vmax.xlane.f32.xlu1 %v1934_v9 }
 0x2b0   : > { %v4573_v10 = vpop.f32.mrb[16].mxu0 }
 0x2b1   : > { %v5731_v51 = vmul.f32 0.25, %v4573_v10  ;;  %v918_v57 = vpop.f32.mrb[17].mxu0 }
 0x2b2   : > { %v5733_v12 = vmul.f32 0.25, %v918_v57 }
 0x2b3   : > { %v1943_v15 = vsel %vm495_vm1, %v5731_v51, -inf }
 0x2b4   : > { %1944 = vmax.xlane.f32.xlu0 %v1943_v15  ;;  %v1940_v16 = vsel %vm495_vm1, %v5733_v12, -inf }
 0x2b8   : > { %v4580_v19 = vpop.f32.mrb[8].mxu1  ;;  %1941 = vmax.xlane.f32.xlu0 %v1940_v16 }
 0x2b9   : > { %v5739_v21 = vmul.f32 0.25, %v4580_v19  ;;  %v1005_v54 = vpop.f32.mrb[9].mxu1 }
 0x2ba   : > { %v5741_v60 = vmul.f32 0.25, %v1005_v54  ;;  %v5805_v54 = vpop.permute.xlu1 %5130 }
 0x2bb   : > { %v1949_v22 = vsel %vm495_vm1, %v5739_v21, -inf }
 0x2bc   : > { %1950 = vmax.xlane.f32.xlu1 %v1949_v22  ;;  %v1946_v24 = vsel %vm495_vm1, %v5741_v60, -inf }
 0x2c0   : > { %1947 = vmax.xlane.f32.xlu1 %v1946_v24  ;;  %v4587_v25 = vpop.f32.mrb[18].mxu0 }
 0x2c1   : > { %v5747_v58 = vmul.f32 0.25, %v4587_v25  ;;  %v1092_v56 = vpop.f32.mrb[19].mxu0 }
 0x2c2   : > { %v5749_v63 = vmul.f32 0.25, %v1092_v56 }
 0x2c3   : > { %v1955_v32 = vsel %vm495_vm1, %v5747_v58, -inf }
 0x2c4   : > { %1956 = vmax.xlane.f32.xlu0 %v1955_v32  ;;  %v1952_v23 = vsel %vm495_vm1, %v5749_v63, -inf }
 0x2c8   : > { %v4594_v50 = vpop.f32.mrb[10].mxu1  ;;  %1953 = vmax.xlane.f32.xlu0 %v1952_v23  ;;  %v4601_v28 = vpop.f32.mrb[20].mxu0 }
 0x2c9   : > { %v5755_v38 = vmul.f32 0.25, %v4594_v50  ;;  %v5757_v39 = vmul.f32 0.25, %v4601_v28  ;;  %v1179_v43 = vpop.f32.mrb[11].mxu1  ;;  %v1266_v45 = vpop.f32.mrb[21].mxu0 }
 0x2ca   : > { %v5759_v46 = vmul.f32 0.25, %v1179_v43  ;;  %v5761_v62 = vmul.f32 0.25, %v1266_v45  ;;  %v5811_v50 = vpop.permute.xlu1 %5135  ;;  %v5813_v28 = vpop.permute.xlu0 %5110 }
 0x2cb   : > { %v1961_v1 = vsel %vm495_vm1, %v5755_v38, -inf  ;;  %v1967_v2 = vsel %vm495_vm1, %v5757_v39, -inf }
 0x2cc   : > { %1962 = vmax.xlane.f32.xlu1 %v1961_v1  ;;  %1968 = vmax.xlane.f32.xlu0 %v1967_v2  ;;  %v1958_v49 = vsel %vm495_vm1, %v5759_v46, -inf  ;;  %v1964_v4 = vsel %vm495_vm1, %v5761_v62, -inf }
 0x2ce   : > { %v5815_v1 = vpop.permute.xlu1 %5140  ;;  %v5817_v2 = vpop.permute.xlu0 %5125 }
 0x2d0   : > { %v4608_v8 = vpop.f32.mrb[12].mxu1  ;;  %1959 = vmax.xlane.f32.xlu1 %v1958_v49  ;;  %1965 = vmax.xlane.f32.xlu0 %v1964_v4 }
 0x2d1   : > { %v5773_v52 = vmul.f32 0.25, %v4608_v8  ;;  %v4615_v14 = vpop.f32.mrb[22].mxu0  ;;  %v1353_v11 = vpop.f32.mrb[13].mxu1 }
 0x2d2   : > { %v5775_v17 = vmul.f32 0.25, %v4615_v14  ;;  %v1440_v20 = vpop.f32.mrb[23].mxu0  ;;  %v5779_v29 = vmul.f32 0.25, %v1353_v11 }
 0x2d3   : > { %v1973_v34 = vsel %vm495_vm1, %v5773_v52, -inf  ;;  %v5783_v30 = vmul.f32 0.25, %v1440_v20 }
 0x2d4   : > { %1974 = vmax.xlane.f32.xlu1 %v1973_v34  ;;  %v1979_v35 = vsel %vm495_vm1, %v5775_v17, -inf  ;;  %v1970_v37 = vsel %vm495_vm1, %v5779_v29, -inf }
 0x2d5   : > { %1980 = vmax.xlane.f32.xlu0 %v1979_v35  ;;  %v1976_v44 = vsel %vm495_vm1, %v5783_v30, -inf }
 0x2d8   : > { %1971 = vmax.xlane.f32.xlu1 %v1970_v37 }
 0x2d9   : > { %v4622_v53 = vpop.f32.mrb[14].mxu1  ;;  %1977 = vmax.xlane.f32.xlu0 %v1976_v44 }
 0x2da   : > { %v5793_v61 = vmul.f32 0.25, %v4622_v53  ;;  %v4629_v3 = vpop.f32.mrb[24].mxu0  ;;  %v1527_v7 = vpop.f32.mrb[15].mxu1 }
 0x2db   : > { %v5795_v9 = vmul.f32 0.25, %v4629_v3  ;;  %v1614_v10 = vpop.f32.mrb[25].mxu0  ;;  %v5797_v57 = vmul.f32 0.25, %v1527_v7 }
 0x2dc   : > { %v1985_v15 = vsel %vm495_vm1, %v5793_v61, -inf  ;;  %v5801_v16 = vmul.f32 0.25, %v1614_v10 }
 0x2dd   : > { %1986 = vmax.xlane.f32.xlu1 %v1985_v15  ;;  %v1991_v19 = vsel %vm495_vm1, %v5795_v9, -inf  ;;  %v1982_v22 = vsel %vm495_vm1, %v5797_v57, -inf }
 0x2de   : > { %1992 = vmax.xlane.f32.xlu0 %v1991_v19  ;;  %v1988_v25 = vsel %vm495_vm1, %v5801_v16, -inf }
 0x2e1   : > { %v4636_v24 = vpop.f32.mrb[16].mxu1  ;;  %1983 = vmax.xlane.f32.xlu1 %v1982_v22 }
 0x2e2   : > { %1989 = vmax.xlane.f32.xlu0 %v1988_v25  ;;  %v1701_v56 = vpop.f32.mrb[17].mxu1  ;;  %v5827_v10 = vmul.f32 0.25, %v4636_v24 }
 0x2e3   : > { %v5831_v15 = vmul.f32 0.25, %v1701_v56 }
 0x2e4   : > { %v4643_v32 = vpop.f32.mrb[26].mxu0  ;;  %v1997_v19 = vsel %vm495_vm1, %v5827_v10, -inf }
 0x2e5   : > { %v1788_v23 = vpop.f32.mrb[27].mxu0  ;;  %v1994_v24 = vsel %vm495_vm1, %v5831_v15, -inf }
 0x2e6   : > { %v5839_v22 = vmul.f32 0.25, %v1788_v23 }
 0x2e9   : > { %v4650_v43 = vpop.f32.mrb[18].mxu1 }
 0x2ea   : > { %v1875_v45 = vpop.f32.mrb[19].mxu1  ;;  %v5843_v25 = vmul.f32 0.25, %v4650_v43 }
 0x2eb   : > { %v5857_v43 = vmul.f32 0.25, %v1875_v45 }
 0x2ec   : > { %v2009_v23 = vsel %vm495_vm1, %v5843_v25, -inf }
 0x2f0   : > { %v1921_v49 = vpop.xlane.xlu1 %1920 }
 0x2f1   : > { %v2013_v4 = vsub.f32 %v5699_v13, %v1921_v49  ;;  %v1918_v8 = vpop.xlane.xlu0 %1917 }
 0x2f2   : > { %v2012_v14 = vsub.f32 %v5701_v18, %v1918_v8 }
 0x2f3   : > { %v2046_v11 = vmul.f32 1.442695, %v2013_v4 }
 0x2f4   : > { %v2044_v20 = vmul.f32 1.442695, %v2012_v14 }
 0x2f5   : > { %5164 = vpow2.f32 %v2046_v11  ;;  %v2006_v11 = vsel %vm495_vm1, %v5857_v43, -inf }
 0x2f6   : > { %5166 = vpow2.f32 %v2044_v20 }
 0x2fc   : > { %v1927_v34 = vpop.xlane.xlu1 %1926 }
 0x2fd   : > { %v2015_v35 = vsub.f32 %v5707_v31, %v1927_v34  ;;  %v1924_v37 = vpop.xlane.xlu0 %1923 }
 0x2fe   : > { %v2014_v44 = vsub.f32 %v5709_v36, %v1924_v37  ;;  %v5835_v36 = vmul.f32 0.25, %v4643_v32  ;;  %v2000_v32 = vsel %vm495_vm1, %v5839_v22, -inf }
 0x2ff   : > { %v5823_v53 = vpop.eup %5164  ;;  %v2050_v3 = vmul.f32 1.442695, %v2015_v35 }
 0x300   : > { %v5825_v7 = vpop.eup %5166  ;;  %v2048_v13 = vmul.f32 1.442695, %v2014_v44  ;;  %v2111_v18 = vsel %vm495_vm1, %v5823_v53, 0.0  ;;  %v2003_v56 = vsel %vm495_vm1, %v5835_v36, -inf }
 0x301   : > { %5168 = vpow2.f32 %v2050_v3  ;;  %2112 = vadd.xlane.f32.xlu0 %v2111_v18  ;;  %v2108_v31 = vsel %vm495_vm1, %v5825_v7, 0.0 }
 0x302   : > { %2109 = vadd.xlane.f32.xlu1 %v2108_v31  ;;  %5170 = vpow2.f32 %v2048_v13 }
 0x304   : > { %v1933_v20 = vpop.xlane.xlu0 %1932 }
 0x305   : > { %1998 = vmax.xlane.f32.xlu0 %v1997_v19  ;;  %v2017_v34 = vsub.f32 %v5715_v42, %v1933_v20 }
 0x306   : > { %1995 = vmax.xlane.f32.xlu1 %v1994_v24 }
 0x307   : > { %v2054_v45 = vmul.f32 1.442695, %v2017_v34 }
 0x308   : > { %v1930_v35 = vpop.xlane.xlu0 %1929 }
 0x309   : > { %2004 = vmax.xlane.f32.xlu0 %v2003_v56  ;;  %v2016_v37 = vsub.f32 %v5717_v55, %v1930_v35  ;;  %5172 = vpow2.f32 %v2054_v45 }
 0x30a   : > { %2001 = vmax.xlane.f32.xlu1 %v2000_v32 }
 0x30b   : > { %v5849_v49 = vpop.eup %5168  ;;  %v2052_v3 = vmul.f32 1.442695, %v2016_v37 }
 0x30c   : > { %v2117_v4 = vsel %vm495_vm1, %v5849_v49, 0.0  ;;  %v5855_v8 = vpop.eup %5170  ;;  %v1939_v44 = vpop.xlane.xlu1 %1938 }
 0x30d   : > { %2010 = vmax.xlane.f32.xlu0 %v2009_v23  ;;  %v2114_v14 = vsel %vm495_vm1, %v5855_v8, 0.0  ;;  %v2019_v13 = vsub.f32 %v5723_v0, %v1939_v44  ;;  %5174 = vpow2.f32 %v2052_v3 }
 0x30e   : > { %2118 = vadd.xlane.f32.xlu1 %v2117_v4 }
 0x30f   : > { %v2058_v31 = vmul.f32 1.442695, %v2019_v13 }
 0x310   : > { %v1936_v18 = vpop.xlane.xlu1 %1935 }
 0x311   : > { %5176 = vpow2.f32 %v2058_v31 }
 0x312   : > { %2115 = vadd.xlane.f32.xlu1 %v2114_v14 }
 0x313   : > { %v5871_v24 = vpop.eup %5172 }
 0x314   : > { %v2123_v42 = vsel %vm495_vm1, %v5871_v24, 0.0 }
 0x316   : > { %2007 = vmax.xlane.f32.xlu1 %v2006_v11 }
 0x317   : > { %v5875_v55 = vpop.eup %5174 }
 0x318   : > { %v2120_v23 = vsel %vm495_vm1, %v5875_v55, 0.0 }
 0x31b   : > { %v5881_v4 = vpop.eup %5176 }
 0x323   : > { %5145 = vrot.lane.b32.xlu0 %v5387_v26, %s5304_s16  ;;  %v2018_v26 = vsub.f32 %v5725_v6, %v1936_v18 }
 0x325   : > { %v2056_v19 = vmul.f32 1.442695, %v2018_v26 }
 0x327   : > { %5150 = vrot.lane.b32.xlu1 %v5402_v33, %s5304_s16  ;;  %5178 = vpow2.f32 %v2056_v19 }
 0x331   : > { %v5886_v34 = vpop.eup %5178 }
 0x341   : > { %v1945_v33 = vpop.xlane.xlu0 %1944 }
 0x342   : > { %v2021_v56 = vsub.f32 %v5731_v51, %v1945_v33  ;;  %2124 = vadd.xlane.f32.xlu0 %v2123_v42  ;;  %v2129_v51 = vsel %vm495_vm1, %v5881_v4, 0.0 }
 0x344   : > { %v2062_v0 = vmul.f32 1.442695, %v2021_v56 }
 0x345   : > { %v1942_v32 = vpop.xlane.xlu0 %1941 }
 0x346   : > { %5180 = vpow2.f32 %v2062_v0  ;;  %v2020_v6 = vsub.f32 %v5733_v12, %v1942_v32  ;;  %2121 = vadd.xlane.f32.xlu0 %v2120_v23  ;;  %v2126_v12 = vsel %vm495_vm1, %v5886_v34, 0.0 }
 0x348   : > { %v2060_v14 = vmul.f32 1.442695, %v2020_v6 }
 0x349   : > { %v1951_v11 = vpop.xlane.xlu1 %1950 }
 0x34a   : > { %5182 = vpow2.f32 %v2060_v14  ;;  %v2023_v20 = vsub.f32 %v5739_v21, %v1951_v11 }
 0x34b   : > { %2130 = vadd.xlane.f32.xlu1 %v2129_v51 }
 0x34c   : > { %v2066_v35 = vmul.f32 1.442695, %v2023_v20 }
 0x34d   : > { %v1948_v45 = vpop.xlane.xlu1 %1947 }
 0x34e   : > { %5184 = vpow2.f32 %v2066_v35  ;;  %v2022_v37 = vsub.f32 %v5741_v60, %v1948_v45 }
 0x34f   : > { %2127 = vadd.xlane.f32.xlu1 %v2126_v12 }
 0x350   : > { %v5891_v44 = vpop.eup %5180  ;;  %v2064_v3 = vmul.f32 1.442695, %v2022_v37 }
 0x351   : > { %v1957_v13 = vpop.xlane.xlu0 %1956  ;;  %v2135_v21 = vsel %vm495_vm1, %v5891_v44, 0.0 }
 0x352   : > { %5186 = vpow2.f32 %v2064_v3  ;;  %v2025_v18 = vsub.f32 %v5747_v58, %v1957_v13  ;;  %2136 = vadd.xlane.f32.xlu0 %v2135_v21 }
 0x354   : > { %v5896_v31 = vpop.eup %5182  ;;  %v2070_v26 = vmul.f32 1.442695, %v2025_v18 }
 0x355   : > { %v1954_v19 = vpop.xlane.xlu0 %1953  ;;  %v2132_v60 = vsel %vm495_vm1, %v5896_v31, 0.0 }
 0x356   : > { %5188 = vpow2.f32 %v2070_v26  ;;  %v2024_v33 = vsub.f32 %v5749_v63, %v1954_v19  ;;  %2133 = vadd.xlane.f32.xlu0 %v2132_v60 }
 0x358   : > { %v5901_v42 = vpop.eup %5184  ;;  %v2068_v56 = vmul.f32 1.442695, %v2024_v33 }
 0x359   : > { %v1963_v0 = vpop.xlane.xlu1 %1962  ;;  %v1969_v32 = vpop.xlane.xlu0 %1968  ;;  %v2141_v58 = vsel %vm495_vm1, %v5901_v42, 0.0 }
 0x35a   : > { %5190 = vpow2.f32 %v2068_v56  ;;  %v2027_v23 = vsub.f32 %v5755_v38, %v1963_v0  ;;  %v2029_v6 = vsub.f32 %v5757_v39, %v1969_v32  ;;  %2142 = vadd.xlane.f32.xlu1 %v2141_v58 }
 0x35c   : > { %v5907_v14 = vpop.eup %5186  ;;  %v2074_v11 = vmul.f32 1.442695, %v2027_v23  ;;  %v2078_v20 = vmul.f32 1.442695, %v2029_v6 }
 0x35d   : > { %v1960_v63 = vpop.xlane.xlu1 %1959  ;;  %v1966_v51 = vpop.xlane.xlu0 %1965  ;;  %v2138_v35 = vsel %vm495_vm1, %v5907_v14, 0.0 }
 0x35e   : > { %5192 = vpow2.f32 %v2074_v11  ;;  %v2026_v45 = vsub.f32 %v5759_v46, %v1960_v63  ;;  %v2028_v37 = vsub.f32 %v5761_v62, %v1966_v51  ;;  %2139 = vadd.xlane.f32.xlu1 %v2138_v35 }
 0x35f   : > { %5194 = vpow2.f32 %v2078_v20 }
 0x360   : > { %v5913_v38 = vpop.eup %5188  ;;  %v2072_v39 = vmul.f32 1.442695, %v2026_v45  ;;  %v2076_v12 = vmul.f32 1.442695, %v2028_v37 }
 0x361   : > { %v1975_v3 = vpop.xlane.xlu1 %1974  ;;  %v2147_v13 = vsel %vm495_vm1, %v5913_v38, 0.0 }
 0x362   : > { %5196 = vpow2.f32 %v2072_v39  ;;  %v2031_v21 = vsub.f32 %v5773_v52, %v1975_v3  ;;  %v1981_v18 = vpop.xlane.xlu0 %1980  ;;  %2148 = vadd.xlane.f32.xlu0 %v2147_v13 }
 0x363   : > { %5198 = vpow2.f32 %v2076_v12  ;;  %v2033_v46 = vsub.f32 %v5775_v17, %v1981_v18 }
 0x364   : > { %v5919_v26 = vpop.eup %5190  ;;  %v2082_v62 = vmul.f32 1.442695, %v2031_v21 }
 0x365   : > { %v2086_v19 = vmul.f32 1.442695, %v2033_v46  ;;  %v1972_v60 = vpop.xlane.xlu1 %1971  ;;  %v2144_v33 = vsel %vm495_vm1, %v5919_v26, 0.0 }
 0x366   : > { %5200 = vpow2.f32 %v2082_v62  ;;  %v2030_v56 = vsub.f32 %v5779_v29, %v1972_v60  ;;  %v1978_v0 = vpop.xlane.xlu0 %1977  ;;  %2145 = vadd.xlane.f32.xlu0 %v2144_v33 }
 0x367   : > { %5202 = vpow2.f32 %v2086_v19  ;;  %v2032_v52 = vsub.f32 %v5783_v30, %v1978_v0 }
 0x368   : > { %v5925_v32 = vpop.eup %5192  ;;  %v2080_v58 = vmul.f32 1.442695, %v2030_v56 }
 0x369   : > { %v5927_v17 = vpop.eup %5194  ;;  %v2084_v23 = vmul.f32 1.442695, %v2032_v52  ;;  %v2153_v6 = vsel %vm495_vm1, %v5925_v32, 0.0 }
 0x36a   : > { %5204 = vpow2.f32 %v2080_v58  ;;  %v1987_v11 = vpop.xlane.xlu1 %1986  ;;  %v2159_v20 = vsel %vm495_vm1, %v5927_v17, 0.0  ;;  %2154 = vadd.xlane.f32.xlu1 %v2153_v6 }
 0x36b   : > { %5206 = vpow2.f32 %v2084_v23  ;;  %v2035_v29 = vsub.f32 %v5793_v61, %v1987_v11  ;;  %v1993_v63 = vpop.xlane.xlu0 %1992  ;;  %2160 = vadd.xlane.f32.xlu0 %v2159_v20 }
 0x36c   : > { %v5934_v30 = vpop.eup %5196  ;;  %v2037_v51 = vsub.f32 %v5795_v9, %v1993_v63 }
 0x36d   : > { %v5937_v35 = vpop.eup %5198  ;;  %v2090_v45 = vmul.f32 1.442695, %v2035_v29  ;;  %v2150_v37 = vsel %vm495_vm1, %v5934_v30, 0.0 }
 0x36e   : > { %v2094_v39 = vmul.f32 1.442695, %v2037_v51  ;;  %v1984_v12 = vpop.xlane.xlu1 %1983  ;;  %v2156_v3 = vsel %vm495_vm1, %v5937_v35, 0.0  ;;  %2151 = vadd.xlane.f32.xlu1 %v2150_v37 }
 0x36f   : > { %5208 = vpow2.f32 %v2090_v45  ;;  %v2034_v61 = vsub.f32 %v5797_v57, %v1984_v12  ;;  %v1990_v13 = vpop.xlane.xlu0 %1989  ;;  %2157 = vadd.xlane.f32.xlu0 %v2156_v3 }
 0x370   : > { %v5944_v21 = vpop.eup %5200  ;;  %5210 = vpow2.f32 %v2094_v39  ;;  %v2036_v9 = vsub.f32 %v5801_v16, %v1990_v13 }
 0x371   : > { %v5947_v18 = vpop.eup %5202  ;;  %v2088_v46 = vmul.f32 1.442695, %v2034_v61  ;;  %v2165_v62 = vsel %vm495_vm1, %v5944_v21, 0.0 }
 0x372   : > { %v2092_v19 = vmul.f32 1.442695, %v2036_v9  ;;  %v2171_v60 = vsel %vm495_vm1, %v5947_v18, 0.0  ;;  %2166 = vadd.xlane.f32.xlu1 %v2165_v62 }
 0x373   : > { %5212 = vpow2.f32 %v2088_v46  ;;  %2172 = vadd.xlane.f32.xlu0 %v2171_v60 }
 0x374   : > { %v5953_v57 = vpop.eup %5204  ;;  %5214 = vpow2.f32 %v2092_v19 }
 0x375   : > { %v5955_v33 = vpop.eup %5206  ;;  %v2162_v16 = vsel %vm495_vm1, %v5953_v57, 0.0 }
 0x376   : > { %v2168_v56 = vsel %vm495_vm1, %v5955_v33, 0.0  ;;  %2163 = vadd.xlane.f32.xlu1 %v2162_v16 }
 0x377   : > { %2169 = vadd.xlane.f32.xlu0 %v2168_v56  ;;  %v5108_v56 = vunpack.i.h.bf16 %v5767_v5 }
 0x379   : > { %v5961_v0 = vpop.eup %5208 }
 0x37a   : > { %v5963_v52 = vpop.eup %5210  ;;  %v2177_v58 = vsel %vm495_vm1, %v5961_v0, 0.0 }
 0x37b   : > { %v2183_v23 = vsel %vm495_vm1, %v5963_v52, 0.0  ;;  %2178 = vadd.xlane.f32.xlu1 %v2177_v58 }
 0x37c   : > { %2184 = vadd.xlane.f32.xlu0 %v2183_v23 }
 0x37d   : > { %v5969_v6 = vpop.eup %5212 }
 0x37e   : > { %v5971_v11 = vpop.eup %5214  ;;  %v2174_v20 = vsel %vm495_vm1, %v5969_v6, 0.0 }
 0x37f   : > { %v2180_v29 = vsel %vm495_vm1, %v5971_v11, 0.0  ;;  %2175 = vadd.xlane.f32.xlu1 %v2174_v20 }
 0x380   : > { %2181 = vadd.xlane.f32.xlu0 %v2180_v29 }
 0x38e   : > { %v2113_v63 = vpop.xlane.xlu0 %2112 }
 0x38f   : > { %5216 = vrcp.f32 %v2113_v63  ;;  %v2110_v51 = vpop.xlane.xlu1 %2109 }
 0x390   : > { %5218 = vrcp.f32 %v2110_v51 }
 0x392   : > { %v1999_v45 = vpop.xlane.xlu0 %1998 }
 0x393   : > { %v2039_v37 = vsub.f32 %v5827_v10, %v1999_v45  ;;  %v1996_v39 = vpop.xlane.xlu1 %1995  ;;  %v5107_v10 = vunpack.i.l.bf16 %v5767_v5 }
 0x394   : > { %v2038_v12 = vsub.f32 %v5831_v15, %v1996_v39 }
 0x395   : > { %v2098_v3 = vmul.f32 1.442695, %v2039_v37 }
 0x396   : > { %v2096_v61 = vmul.f32 1.442695, %v2038_v12  ;;  %v2005_v13 = vpop.xlane.xlu0 %2004 }
 0x397   : > { %5220 = vpow2.f32 %v2098_v3  ;;  %v2041_v9 = vsub.f32 %v5835_v36, %v2005_v13  ;;  %v2002_v46 = vpop.xlane.xlu1 %2001 }
 0x398   : > { %5222 = vpow2.f32 %v2096_v61  ;;  %v2040_v62 = vsub.f32 %v5839_v22, %v2002_v46  ;;  %v5987_v22 = vpack.c.bf16 %v5108_v56, %v5107_v10  ;;  %v5112_v46 = vunpack.i.l.bf16 %v5813_v28 }
 0x399   : > { %v5217_v19 = vpop.eup %5216  ;;  %v2102_v60 = vmul.f32 1.442695, %v2041_v9  ;;  %v5113_v9 = vunpack.i.h.bf16 %v5813_v28 }
 0x39a   : > { %v5219_v16 = vpop.eup %5218  ;;  %v2100_v58 = vmul.f32 1.442695, %v2040_v62  ;;  %v2011_v23 = vpop.xlane.xlu0 %2010  ;;  %v2237_v36 = vmul.f32 %v5217_v19, %v5823_v53 }
 0x39b   : > { %5224 = vpow2.f32 %v2102_v60  ;;  %v2043_v15 = vsub.f32 %v5843_v25, %v2011_v23  ;;  %v2119_v20 = vpop.xlane.xlu1 %2118  ;;  %v2236_v29 = vmul.f32 %v5219_v16, %v5825_v7  ;;  %v4951_v16 = vpack.c.bf16 %v5113_v9, %v5112_v46 }
 0x39c   : > { %5226 = vpow2.f32 %v2100_v58  ;;  %v5128_v46 = vunpack.i.h.bf16 %v5817_v2 }
 0x39d   : > { %v2106_v63 = vmul.f32 1.442695, %v2043_v15  ;;  %4655 = vmatprep.mubr.msk.f32.mxu0 %vm495_vm1, %v2236_v29  ;;  %5228 = vrcp.f32 %v2119_v20 }
 0x39e   : > { %4656 = vmatmul.mubr.msk.f32.vlgmr.msra.gmra.mrb[28].mxu0 %vm495_vm1, %v2237_v36  ;;  %v5118_v36 = vunpack.i.h.bf16 %v5777_v27 }
 0x39f   : > { %4942 = vmatpush3.bf16.msra.mxu0 %v5418_v41  ;;  %v2116_v5 = vpop.xlane.xlu1 %2115 }
 0x3a0   : > { %4948 = vmatprep.subr.bf16.mxu0 %v5987_v22  ;;  %5230 = vrcp.f32 %v2116_v5 }
 0x3a1   : > { %v5992_v25 = vpop.eup %5220  ;;  %5232 = vpow2.f32 %v2106_v63 }
 0x3a2   : > { %v5994_v7 = vpop.eup %5222  ;;  %v2189_v53 = vsel %vm495_vm1, %v5992_v25, 0.0 }
 0x3a3   : > { %2190 = vadd.xlane.f32.xlu0 %v2189_v53  ;;  %v2008_v51 = vpop.xlane.xlu1 %2007  ;;  %v2186_v45 = vsel %vm495_vm1, %v5994_v7, 0.0 }
 0x3a4   : > { %v2042_v37 = vsub.f32 %v5857_v43, %v2008_v51  ;;  %2187 = vadd.xlane.f32.xlu1 %v2186_v45 }
 0x3a5   : > { %v6001_v41 = vpop.eup %5224 }
 0x3a6   : > { %v2104_v39 = vmul.f32 1.442695, %v2042_v37  ;;  %v2195_v12 = vsel %vm495_vm1, %v6001_v41, 0.0  ;;  %v6005_v3 = vpop.eup %5226 }
 0x3a7   : > { %2196 = vadd.xlane.f32.xlu0 %v2195_v12  ;;  %v5229_v61 = vpop.eup %5228  ;;  %v2192_v43 = vsel %vm495_vm1, %v6005_v3, 0.0 }
 0x3a8   : > { %5234 = vpow2.f32 %v2104_v39  ;;  %v2239_v60 = vmul.f32 %v5229_v61, %v5849_v49  ;;  %v6028_v49 = vpop.permute.xlu0 %5145  ;;  %v5122_v39 = vunpack.i.l.bf16 %v5791_v59 }
 0x3aa   : > { %v5231_v13 = vpop.eup %5230 }
 0x3ab   : > { %v6011_v62 = vpop.eup %5232  ;;  %2193 = vadd.xlane.f32.xlu0 %v2192_v43  ;;  %v2238_v19 = vmul.f32 %v5231_v13, %v5855_v8 }
 0x3ac   : > { %v2201_v56 = vsel %vm495_vm1, %v6011_v62, 0.0 }
 0x3ad   : > { %4662 = vmatprep.mubr.msk.f32.mxu1 %vm495_vm1, %v2238_v19 }
 0x3ae   : > { %4663 = vmatmul.mubr.msk.f32.vlgmr.msra.gmra.mrb[20].mxu1 %vm495_vm1, %v2239_v60 }
 0x3af   : > { %4946 = vmatpush3.bf16.msra.mxu1 %v5434_v48  ;;  %2202 = vadd.xlane.f32.xlu0 %v2201_v56  ;;  %v6030_v48 = vpop.permute.xlu1 %5150 }
 0x3b0   : > { %4952 = vmatprep.subr.bf16.mxu1 %v4951_v16 }
 0x3b2   : > { %v6020_v28 = vpop.eup %5234 }
 0x3b3   : > { %v2198_v10 = vsel %vm495_vm1, %v6020_v28, 0.0 }
 0x3b4   : > { %2199 = vadd.xlane.f32.xlu1 %v2198_v10  ;;  %v5133_v10 = vunpack.i.h.bf16 %v5805_v54 }
 0x3c5   : > { %5155 = vrot.lane.b32.xlu0 %v5416_v40, %s5304_s16  ;;  %5160 = vrot.lane.b32.xlu1 %v5432_v47, %s5304_s16  ;;  %v5117_v40 = vunpack.i.l.bf16 %v5777_v27  ;;  %v5123_v27 = vunpack.i.h.bf16 %v5791_v59  ;;  %v5127_v59 = vunpack.i.l.bf16 %v5817_v2  ;;  %v5132_v2 = vunpack.i.l.bf16 %v5805_v54 }
 0x3c7   : > { %v4955_v53 = vpack.c.bf16 %v5118_v36, %v5117_v40  ;;  %v4959_v61 = vpack.c.bf16 %v5123_v27, %v5122_v39  ;;  %v4963_v19 = vpack.c.bf16 %v5128_v46, %v5127_v59  ;;  %v5148_v39 = vunpack.i.h.bf16 %v6028_v49 }
 0x3c8   : > { %v5153_v59 = vunpack.i.h.bf16 %v6030_v48 }
 0x3cf   : > { %v2125_v8 = vpop.xlane.xlu0 %2124 }
 0x3d0   : > { %5236 = vrcp.f32 %v2125_v8 }
 0x3d3   : > { %v2122_v58 = vpop.xlane.xlu0 %2121 }
 0x3d4   : > { %5238 = vrcp.f32 %v2122_v58 }
 0x3d8   : > { %v2131_v23 = vpop.xlane.xlu1 %2130 }
 0x3d9   : > { %5240 = vrcp.f32 %v2131_v23  ;;  %v4967_v23 = vpack.c.bf16 %v5133_v10, %v5132_v2 }
 0x3da   : > { %v5237_v20 = vpop.eup %5236 }
 0x3db   : > { %v2241_v5 = vmul.f32 %v5237_v20, %v5871_v24 }
 0x3dc   : > { %v2128_v15 = vpop.xlane.xlu1 %2127 }
 0x3dd   : > { %5242 = vrcp.f32 %v2128_v15 }
 0x3de   : > { %v5239_v29 = vpop.eup %5238 }
 0x3df   : > { %v2137_v63 = vpop.xlane.xlu0 %2136  ;;  %v2240_v47 = vmul.f32 %v5239_v29, %v5875_v55 }
 0x3e0   : > { %5244 = vrcp.f32 %v2137_v63 }
 0x3e1   : > { %4669 = vmatprep.mubr.msk.f32.mxu0 %vm495_vm1, %v2240_v47 }
 0x3e2   : > { %4670 = vmatmul.mubr.msk.f32.vlgmr.msra.gmra.mrb[30].mxu0 %vm495_vm1, %v2241_v5 }
 0x3e3   : > { %4950 = vmatpush3.bf16.msra.mxu0 %v5987_v22  ;;  %v2134_v51 = vpop.xlane.xlu0 %2133  ;;  %v5241_v45 = vpop.eup %5240 }
 0x3e4   : > { %4956 = vmatprep.subr.bf16.mxu0 %v4955_v53  ;;  %5246 = vrcp.f32 %v2134_v51  ;;  %v2243_v12 = vmul.f32 %v5241_v45, %v5881_v4 }
 0x3e7   : > { %v5243_v37 = vpop.eup %5242  ;;  %v2143_v55 = vpop.xlane.xlu1 %2142 }
 0x3e8   : > { %v2242_v24 = vmul.f32 %v5243_v37, %v5886_v34  ;;  %5248 = vrcp.f32 %v2143_v55  ;;  %v5147_v55 = vunpack.i.l.bf16 %v6028_v49 }
 0x3ea   : > { %4676 = vmatprep.mubr.msk.f32.mxu1 %vm495_vm1, %v2242_v24  ;;  %v5245_v13 = vpop.eup %5244 }
 0x3eb   : > { %4677 = vmatmul.mubr.msk.f32.vlgmr.msra.gmra.mrb[22].mxu1 %vm495_vm1, %v2243_v12  ;;  %v2140_v22 = vpop.xlane.xlu1 %2139  ;;  %v2245_v4 = vmul.f32 %v5245_v13, %v5891_v44 }
 0x3ec   : > { %4954 = vmatpush3.bf16.msra.mxu1 %v4951_v16  ;;  %5250 = vrcp.f32 %v2140_v22 }
 0x3ed   : > { %4960 = vmatprep.subr.bf16.mxu1 %v4959_v61 }
 0x3ee   : > { %v5247_v9 = vpop.eup %5246 }
 0x3ef   : > { %v2149_v43 = vpop.xlane.xlu0 %2148  ;;  %v2244_v34 = vmul.f32 %v5247_v9, %v5896_v31 }
 0x3f0   : > { %5252 = vrcp.f32 %v2149_v43  ;;  %v5152_v43 = vunpack.i.l.bf16 %v6030_v48 }
 0x3f1   : > { %4683 = vmatprep.mubr.msk.f32.mxu0 %vm495_vm1, %v2244_v34 }
 0x3f2   : > { %4684 = vmatmul.mubr.msk.f32.vlgmr.msra.gmra.mrb[32].mxu0 %vm495_vm1, %v2245_v4  ;;  %v5249_v16 = vpop.eup %5248 }
 0x3f3   : > { %4958 = vmatpush3.bf16.msra.mxu0 %v4955_v53  ;;  %v2146_v60 = vpop.xlane.xlu0 %2145  ;;  %v2247_v44 = vmul.f32 %v5249_v16, %v5901_v42  ;;  %v5137_v42 = vunpack.i.l.bf16 %v5811_v50 }
 0x3f4   : > { %4964 = vmatprep.subr.bf16.mxu0 %v4963_v19  ;;  %5254 = vrcp.f32 %v2146_v60 }
 0x3f6   : > { %v5251_v56 = vpop.eup %5250 }
 0x3f7   : > { %v2155_v8 = vpop.xlane.xlu1 %2154  ;;  %v2246_v31 = vmul.f32 %v5251_v56, %v5907_v14  ;;  %v5138_v14 = vunpack.i.h.bf16 %v5811_v50  ;;  %v4983_v56 = vpack.c.bf16 %v5153_v59, %v5152_v43 }
 0x3f8   : > { %v2161_v58 = vpop.xlane.xlu0 %2160  ;;  %5256 = vrcp.f32 %v2155_v8 }
 0x3f9   : > { %4690 = vmatprep.mubr.msk.f32.mxu1 %vm495_vm1, %v2246_v31  ;;  %5258 = vrcp.f32 %v2161_v58  ;;  %v4971_v5 = vpack.c.bf16 %v5138_v14, %v5137_v42 }
 0x3fa   : > { %4691 = vmatmul.mubr.msk.f32.vlgmr.msra.gmra.mrb[24].mxu1 %vm495_vm1, %v2247_v44  ;;  %v5253_v29 = vpop.eup %5252 }
 0x3fb   : > { %4962 = vmatpush3.bf16.msra.mxu1 %v4959_v61  ;;  %v2152_v15 = vpop.xlane.xlu1 %2151  ;;  %v2249_v63 = vmul.f32 %v5253_v29, %v5913_v38  ;;  %v5142_v38 = vunpack.i.l.bf16 %v5815_v1  ;;  %v3564_v29 = vld [vmem:[%s6224_s2] sm:$0xff] }
 0x3fc   : > { %v2158_v20 = vpop.xlane.xlu0 %2157  ;;  %4968 = vmatprep.subr.bf16.mxu1 %v4967_v23  ;;  %5260 = vrcp.f32 %v2152_v15 }
 0x3fd   : > { %5262 = vrcp.f32 %v2158_v20 }
 0x3fe   : > { %v5255_v54 = vpop.eup %5254 }
 0x3ff   : > { %v2167_v36 = vpop.xlane.xlu1 %2166  ;;  %v2248_v40 = vmul.f32 %v5255_v54, %v5919_v26  ;;  %v5143_v26 = vunpack.i.h.bf16 %v5815_v1  ;;  %v4979_v1 = vpack.c.bf16 %v5148_v39, %v5147_v55  ;;  %v3565_v54 = vld [vmem:[%s6224_s2 + $0x8] sm:$0xff] }
 0x400   : > { %v2173_v47 = vpop.xlane.xlu0 %2172  ;;  %5264 = vrcp.f32 %v2167_v36 }
 0x401   : > { %4697 = vmatprep.mubr.msk.f32.mxu0 %vm495_vm1, %v2248_v40  ;;  %5266 = vrcp.f32 %v2173_v47  ;;  %v4975_v46 = vpack.c.bf16 %v5143_v26, %v5142_v38  ;;  %v4995_v40 = vpack.c.bf16 %v3565_v54, %v3564_v29 }
 0x402   : > { %4698 = vmatmul.mubr.msk.f32.vlgmr.msra.gmra.mrb[34].mxu0 %vm495_vm1, %v2249_v63  ;;  %v5257_v51 = vpop.eup %5256 }
 0x403   : > { %4966 = vmatpush3.bf16.msra.mxu0 %v4963_v19  ;;  %v2164_v53 = vpop.xlane.xlu1 %2163  ;;  %v5259_v50 = vpop.eup %5258  ;;  %v2251_v12 = vmul.f32 %v5257_v51, %v5925_v32  ;;  %v3567_v51 = vld [vmem:[%s6224_s2 + $0x18] sm:$0xff] }
 0x404   : > { %4972 = vmatprep.subr.bf16.mxu0 %v4971_v5  ;;  %v2170_v45 = vpop.xlane.xlu0 %2169  ;;  %5268 = vrcp.f32 %v2164_v53  ;;  %v2253_v13 = vmul.f32 %v5259_v50, %v5927_v17  ;;  %v3566_v53 = vld [vmem:[%s6224_s2 + $0x10] sm:$0xff] }
 0x405   : > { %5270 = vrcp.f32 %v2170_v45 }
 0x406   : > { %v5261_v37 = vpop.eup %5260 }
 0x407   : > { %v5263_v27 = vpop.eup %5262  ;;  %v2250_v24 = vmul.f32 %v5261_v37, %v5934_v30 }
 0x408   : > { %v2179_v61 = vpop.xlane.xlu1 %2178  ;;  %v2252_v22 = vmul.f32 %v5263_v27, %v5937_v35 }
 0x409   : > { %v2185_v9 = vpop.xlane.xlu0 %2184  ;;  %4704 = vmatprep.mubr.msk.f32.mxu1 %vm495_vm1, %v2250_v24  ;;  %5272 = vrcp.f32 %v2179_v61  ;;  %v3569_v24 = vld [vmem:[%s6224_s2 + $0x28] sm:$0xff] }
 0x40a   : > { %4711 = vmatprep.mubr.msk.f32.mxu0 %vm495_vm1, %v2252_v22  ;;  %4705 = vmatmul.mubr.msk.f32.vlgmr.msra.gmra.mrb[26].mxu1 %vm495_vm1, %v2251_v12  ;;  %v5265_v30 = vpop.eup %5264  ;;  %5274 = vrcp.f32 %v2185_v9 }
 0x40b   : > { %4712 = vmatmul.mubr.msk.f32.vlgmr.msra.gmra.mrb[36].mxu0 %vm495_vm1, %v2253_v13  ;;  %4970 = vmatpush3.bf16.msra.mxu1 %v4967_v23  ;;  %v5267_v35 = vpop.eup %5266  ;;  %v2255_v19 = vmul.f32 %v5265_v30, %v5944_v21 }
 0x40c   : > { %4974 = vmatpush3.bf16.msra.mxu0 %v4971_v5  ;;  %4976 = vmatprep.subr.bf16.mxu1 %v4975_v46  ;;  %v2176_v32 = vpop.xlane.xlu1 %2175  ;;  %v2257_v16 = vmul.f32 %v5267_v35, %v5947_v18 }
 0x40d   : > { %v2182_v17 = vpop.xlane.xlu0 %2181  ;;  %4980 = vmatprep.subr.bf16.mxu0 %v4979_v1  ;;  %5276 = vrcp.f32 %v2176_v32 }
 0x40e   : > { %v5269_v49 = vpop.eup %5268  ;;  %5278 = vrcp.f32 %v2182_v17 }
 0x40f   : > { %v5271_v34 = vpop.eup %5270  ;;  %v2254_v4 = vmul.f32 %v5269_v49, %v5953_v57 }
 0x410   : > { %v2256_v60 = vmul.f32 %v5271_v34, %v5955_v33 }
 0x411   : > { %4718 = vmatprep.mubr.msk.f32.mxu1 %vm495_vm1, %v2254_v4 }
 0x412   : > { %4725 = vmatprep.mubr.msk.f32.mxu0 %vm495_vm1, %v2256_v60  ;;  %4719 = vmatmul.mubr.msk.f32.vlgmr.msra.gmra.mrb[28].mxu1 %vm495_vm1, %v2255_v19 }
 0x413   : > { %4726 = vmatmul.mubr.msk.f32.vlgmr.msra.gmra.mrb[38].mxu0 %vm495_vm1, %v2257_v16  ;;  %4978 = vmatpush3.bf16.msra.mxu1 %v4975_v46  ;;  %v5273_v48 = vpop.eup %5272 }
 0x414   : > { %4982 = vmatpush3.bf16.msra.mxu0 %v4979_v1  ;;  %4984 = vmatprep.subr.bf16.mxu1 %v4983_v56  ;;  %v5275_v57 = vpop.eup %5274  ;;  %v2259_v18 = vmul.f32 %v5273_v48, %v5961_v0 }
 0x415   : > { %v2261_v8 = vmul.f32 %v5275_v57, %v5963_v52 }
 0x417   : > { %v5277_v10 = vpop.eup %5276 }
 0x418   : > { %v5279_v21 = vpop.eup %5278  ;;  %v2258_v33 = vmul.f32 %v5277_v10, %v5969_v6 }
 0x419   : > { %v2260_v2 = vmul.f32 %v5279_v21, %v5971_v11 }
 0x41a   : > { %4732 = vmatprep.mubr.msk.f32.mxu1 %vm495_vm1, %v2258_v33 }
 0x41b   : > { %4739 = vmatprep.mubr.msk.f32.mxu0 %vm495_vm1, %v2260_v2  ;;  %4733 = vmatmul.mubr.msk.f32.vlgmr.msra.gmra.mrb[30].mxu1 %vm495_vm1, %v2259_v18 }
 0x41c   : > { %4740 = vmatmul.mubr.msk.f32.vlgmr.msra.gmra.mrb[40].mxu0 %vm495_vm1, %v2261_v8  ;;  %4986 = vmatpush3.bf16.msra.mxu1 %v4983_v56 }
 0x430   : > { %v2191_v31 = vpop.xlane.xlu0 %2190 }
 0x431   : > { %5280 = vrcp.f32 %v2191_v31  ;;  %v2188_v44 = vpop.xlane.xlu1 %2187 }
 0x432   : > { %5282 = vrcp.f32 %v2188_v44 }
 0x434   : > { %v2197_v6 = vpop.xlane.xlu0 %2196 }
 0x438   : > { %v2194_v58 = vpop.xlane.xlu0 %2193 }
 0x439   : > { %5284 = vrcp.f32 %v2194_v58 }
 0x43a   : > { %5286 = vrcp.f32 %v2197_v6 }
 0x43b   : > { %v5281_v0 = vpop.eup %5280 }
 0x43c   : > { %v5283_v11 = vpop.eup %5282  ;;  %v2203_v52 = vpop.xlane.xlu0 %2202  ;;  %v2263_v15 = vmul.f32 %v5281_v0, %v5992_v25 }
 0x43d   : > { %v2262_v23 = vmul.f32 %v5283_v11, %v5994_v7  ;;  %5288 = vrcp.f32 %v2203_v52 }
 0x43f   : > { %4746 = vmatprep.mubr.msk.f32.mxu1 %vm495_vm1, %v2262_v23 }
 0x440   : > { %v5156_v20 = vpop.permute.xlu0 %5155  ;;  %4747 = vmatmul.mubr.msk.f32.vlgmr.msra.gmra.mrb[32].mxu1 %vm495_vm1, %v2263_v15 }
 0x441   : > { %v5158_v14 = vunpack.i.h.bf16 %v5156_v20  ;;  %v5157_v42 = vunpack.i.l.bf16 %v5156_v20  ;;  %v2200_v36 = vpop.xlane.xlu1 %2199 }
 0x442   : > { %5290 = vrcp.f32 %v2200_v36 }
 0x443   : > { %v5285_v7 = vpop.eup %5284  ;;  %v4987_v25 = vpack.c.bf16 %v5158_v14, %v5157_v42 }
 0x444   : > { %v5287_v63 = vpop.eup %5286  ;;  %v2264_v47 = vmul.f32 %v5285_v7, %v6005_v3  ;;  %v4999_v3 = vpack.c.bf16 %v3567_v51, %v3566_v53 }
 0x445   : > { %4988 = vmatprep.subr.bf16.mxu0 %v4987_v25  ;;  %v5161_v5 = vpop.permute.xlu1 %5160  ;;  %v2265_v37 = vmul.f32 %v5287_v63, %v6001_v41  ;;  %v3568_v41 = vld [vmem:[%s6224_s2 + $0x20] sm:$0xff] }
 0x446   : > { %v5163_v45 = vunpack.i.h.bf16 %v5161_v5  ;;  %v5162_v50 = vunpack.i.l.bf16 %v5161_v5  ;;  %4990 = vmatpush3.bf16.msra.mxu0 %v4987_v25  ;;  %4753 = vmatprep.mubr.msk.f32.mxu0 %vm495_vm1, %v2264_v47  ;;  %v5003_v12 = vpack.c.bf16 %v3569_v24, %v3568_v41 }
 0x447   : > { %4996 = vmatprep.subr.bf16.mxu0 %v4995_v40  ;;  %v5289_v38 = vpop.eup %5288 }
 0x448   : > { %v4991_v26 = vpack.c.bf16 %v5163_v45, %v5162_v50  ;;  %v2267_v55 = vmul.f32 %v5289_v38, %v6011_v62  ;;  %v3571_v62 = vld [vmem:[%s6224_s2 + $0x38] sm:$0xff] }
 0x449   : > { %4754 = vmatmul.mubr.msk.f32.vlgmr.msra.gmra.mrb[42].mxu0 %vm495_vm1, %v2265_v37 }
 0x44a   : > { %4992 = vmatprep.subr.bf16.mxu1 %v4991_v26  ;;  %4998 = vmatpush3.bf16.msra.mxu0 %v4995_v40 }
 0x44b   : > { %4994 = vmatpush3.bf16.msra.mxu1 %v4991_v26  ;;  %5004 = vmatprep.subr.bf16.mxu0 %v5003_v12 }
 0x44c   : > { %v5291_v27 = vpop.eup %5290  ;;  %5000 = vmatprep.subr.bf16.mxu1 %v4999_v3 }
 0x44d   : > { %v2266_v39 = vmul.f32 %v5291_v27, %v6020_v28  ;;  %v3570_v28 = vld [vmem:[%s6224_s2 + $0x30] sm:$0xff] }
 0x44e   : > { %v5007_v61 = vpack.c.bf16 %v3571_v62, %v3570_v28 }
 0x44f   : > { %4760 = vmatprep.mubr.msk.f32.mxu1 %vm495_vm1, %v2266_v39 }
 0x450   : > { %4761 = vmatmul.mubr.msk.f32.vlgmr.msra.gmra.mrb[34].mxu1 %vm495_vm1, %v2267_v55 }
 0x451   : > { %5002 = vmatpush3.bf16.msra.mxu1 %v4999_v3 }
 0x452   : > { %5008 = vmatprep.subr.bf16.mxu1 %v5007_v61 }
 0x471   : > { %v4657_v22 = vpop.f32.mrb[28].mxu0 }
 0x472   : > { %v2340_v13 = vpop.f32.mrb[29].mxu0 }
 0x473   : > { %4767 = vmatprep.mubr.msk.f32.mxu0 %vm495_vm1, %v2340_v13 }
 0x474   : > { %4768 = vmatmul.mubr.msk.f32.vlgmr.msra.gmra.mrb[44].mxu0 %vm495_vm1, %v4657_v22 }
 0x475   : > { %5006 = vmatpush3.bf16.msra.mxu0 %v5003_v12 }
 0x481   : > { %v4664_v9 = vpop.f32.mrb[20].mxu1 }
 0x482   : > { %v2421_v46 = vpop.f32.mrb[21].mxu1 }
 0x483   : > { %4770 = vmatprep.mubr.msk.f32.mxu0 %vm495_vm1, %v2421_v46 }
 0x484   : > { %4771 = vmatmul.mubr.msk.f32.gmra.mrb[46].mxu0 %vm495_vm1, %v4664_v9 }
 0x4b5   : > { %v4671_v1 = vpop.f32.mrb[30].mxu0 }
 0x4b6   : > { %v2502_v30 = vpop.f32.mrb[31].mxu0 }
 0x4b7   : > { %4773 = vmatprep.mubr.msk.f32.mxu0 %vm495_vm1, %v2502_v30 }
 0x4b8   : > { %4774 = vmatmul.mubr.msk.f32.gmra.mrb[48].mxu0 %vm495_vm1, %v4671_v1 }
 0x4be   : > { %v4678_v32 = vpop.f32.mrb[22].mxu1 }
 0x4bf   : > { %v2583_v35 = vpop.f32.mrb[23].mxu1 }
 0x4c0   : > { %4776 = vmatprep.mubr.msk.f32.mxu0 %vm495_vm1, %v2583_v35 }
 0x4c1   : > { %4777 = vmatmul.mubr.msk.f32.gmra.mrb[50].mxu0 %vm495_vm1, %v4678_v32 }
 0x4c5   : > { %v4685_v17 = vpop.f32.mrb[32].mxu0 }
 0x4c6   : > { %v2664_v49 = vpop.f32.mrb[33].mxu0 }
 0x4c7   : > { %4783 = vmatprep.mubr.msk.f32.mxu1 %vm495_vm1, %v2664_v49 }
 0x4c8   : > { %4784 = vmatmul.mubr.msk.f32.vlgmr.msra.gmra.mrb[36].mxu1 %vm495_vm1, %v4685_v17 }
 0x4c9   : > { %5010 = vmatpush3.bf16.msra.mxu1 %v5007_v61 }
 0x4cd   : > { %v4692_v59 = vpop.f32.mrb[24].mxu1 }
 0x4ce   : > { %v2745_v43 = vpop.f32.mrb[25].mxu1 }
 0x4cf   : > { %4786 = vmatprep.mubr.msk.f32.mxu1 %vm495_vm1, %v2745_v43 }
 0x4d0   : > { %4787 = vmatmul.mubr.msk.f32.gmra.mrb[38].mxu1 %vm495_vm1, %v4692_v59 }
 0x4d5   : > { %v4699_v34 = vpop.f32.mrb[34].mxu0 }
 0x4d6   : > { %v2826_v4 = vpop.f32.mrb[35].mxu0 }
 0x4d7   : > { %4789 = vmatprep.mubr.msk.f32.mxu1 %vm495_vm1, %v2826_v4 }
 0x4d8   : > { %4790 = vmatmul.mubr.msk.f32.gmra.mrb[40].mxu1 %vm495_vm1, %v4699_v34 }
 0x4dd   : > { %v4706_v19 = vpop.f32.mrb[26].mxu1 }
 0x4de   : > { %v4713_v60 = vpop.f32.mrb[36].mxu0  ;;  %v2907_v16 = vpop.f32.mrb[27].mxu1 }
 0x4df   : > { %v2988_v56 = vpop.f32.mrb[37].mxu0  ;;  %4792 = vmatprep.mubr.msk.f32.mxu1 %vm495_vm1, %v2907_v16 }
 0x4e0   : > { %4799 = vmatprep.mubr.msk.f32.mxu0 %vm495_vm1, %v2988_v56  ;;  %4793 = vmatmul.mubr.msk.f32.gmra.mrb[42].mxu1 %vm495_vm1, %v4706_v19 }
 0x4e1   : > { %4800 = vmatmul.mubr.msk.f32.vlgmr.msra.gmra.mrb[52].mxu0 %vm495_vm1, %v4713_v60 }
 0x4e5   : > { %v4720_v48 = vpop.f32.mrb[28].mxu1 }
 0x4e6   : > { %v4727_v57 = vpop.f32.mrb[38].mxu0  ;;  %v3069_v10 = vpop.f32.mrb[29].mxu1 }
 0x4e7   : > { %v3150_v21 = vpop.f32.mrb[39].mxu0  ;;  %4802 = vmatprep.mubr.msk.f32.mxu0 %vm495_vm1, %v3069_v10 }
 0x4e8   : > { %4803 = vmatmul.mubr.msk.f32.gmra.mrb[54].mxu0 %vm495_vm1, %v4720_v48 }
 0x4e9   : > { %4805 = vmatprep.mubr.msk.f32.mxu0 %vm495_vm1, %v3150_v21 }
 0x4ec   : > { %4806 = vmatmul.mubr.msk.f32.gmra.mrb[56].mxu0 %vm495_vm1, %v4727_v57 }
 0x4ee   : > { %v4734_v33 = vpop.f32.mrb[30].mxu1 }
 0x4ef   : > { %v4741_v18 = vpop.f32.mrb[40].mxu0  ;;  %v3231_v2 = vpop.f32.mrb[31].mxu1 }
 0x4f0   : > { %v3312_v8 = vpop.f32.mrb[41].mxu0  ;;  %4808 = vmatprep.mubr.msk.f32.mxu0 %vm495_vm1, %v3231_v2 }
 0x4f1   : > { %4815 = vmatprep.mubr.msk.f32.mxu1 %vm495_vm1, %v3312_v8  ;;  %4809 = vmatmul.mubr.msk.f32.gmra.mrb[58].mxu0 %vm495_vm1, %v4734_v33 }
 0x4f2   : > { %4816 = vmatmul.mubr.msk.f32.vlgmr.msra.gmra.mrb[44].mxu1 %vm495_vm1, %v4741_v18 }
 0x513   : > { %v4748_v31 = vpop.f32.mrb[32].mxu1 }
 0x514   : > { %v3393_v44 = vpop.f32.mrb[33].mxu1 }
 0x515   : > { %4818 = vmatprep.mubr.msk.f32.mxu1 %vm495_vm1, %v3393_v44 }
 0x516   : > { %4819 = vmatmul.mubr.msk.f32.gmra.mrb[46].mxu1 %vm495_vm1, %v4748_v31 }
 0x51c   : > { %v4755_v6 = vpop.f32.mrb[42].mxu0 }
 0x51d   : > { %v3474_v58 = vpop.f32.mrb[43].mxu0 }
 0x51e   : > { %4821 = vmatprep.mubr.msk.f32.mxu1 %vm495_vm1, %v3474_v58 }
 0x51f   : > { %4822 = vmatmul.mubr.msk.f32.gmra.mrb[48].mxu1 %vm495_vm1, %v4755_v6 }
 0x523   : > { %v4762_v0 = vpop.f32.mrb[34].mxu1 }
 0x524   : > { %v3555_v11 = vpop.f32.mrb[35].mxu1 }
 0x525   : > { %4824 = vmatprep.mubr.msk.f32.mxu1 %vm495_vm1, %v3555_v11 }
 0x526   : > { %4825 = vmatmul.mubr.msk.f32.gmra.mrb[50].mxu1 %vm495_vm1, %v4762_v0 }
 0x547   : > { %v4769_v52 = vpop.f32.mrb[44].mxu0 }
 0x548   : > { %v3662_v23 = vpop.f32.mrb[45].mxu0  ;;  %v4095_v7 = vsel %vm217_vm0, %v4769_v52, 0.0  ;;  %v4368_v52 = vld [vmem:[%s6225_s3] ss:$0 sm:$0xff] }
 0x549   : > { %v4088_v63 = vsel %vm217_vm0, %v3662_v23, 0.0 }
 0x557   : > { %v4772_v15 = vpop.f32.mrb[46].mxu0 }
 0x558   : > { %v3672_v20 = vpop.f32.mrb[47].mxu0  ;;  %v4109_v45 = vsel %vm217_vm0, %v4772_v15, 0.0 }
 0x559   : > { %v4102_v26 = vsel %vm217_vm0, %v3672_v20, 0.0 }
 0x58b   : > { %v4775_v29 = vpop.f32.mrb[48].mxu0 }
 0x58c   : > { %v3682_v54 = vpop.f32.mrb[49].mxu0  ;;  %v4123_v55 = vsel %vm217_vm0, %v4775_v29, 0.0 }
 0x58d   : > { %v4116_v12 = vsel %vm217_vm0, %v3682_v54, 0.0 }
 0x594   : > { %v4778_v14 = vpop.f32.mrb[50].mxu0 }
 0x595   : > { %v3692_v42 = vpop.f32.mrb[51].mxu0  ;;  %v4137_v13 = vsel %vm217_vm0, %v4778_v14, 0.0 }
 0x596   : > { %v4130_v30 = vsel %vm217_vm0, %v3692_v42, 0.0 }
 0x59b   : > { %v4785_v36 = vpop.f32.mrb[36].mxu1 }
 0x59c   : > { %v4096_v25 = vsel %vm217_vm0, %v4785_v36, 0.0  ;;  %v3791_v40 = vpop.f32.mrb[37].mxu1 }
 0x59d   : > { %v4097_v47 = vadd.f32 %v4096_v25, %v4095_v7  ;;  %v4089_v5 = vsel %vm217_vm0, %v3791_v40, 0.0 }
 0x59e   : > { %v4090_v53 = vadd.f32 %v4089_v5, %v4088_v63 }
 0x5a3   : > { %v4788_v51 = vpop.f32.mrb[38].mxu1 }
 0x5a4   : > { %v4110_v50 = vsel %vm217_vm0, %v4788_v51, 0.0  ;;  %v3801_v37 = vpop.f32.mrb[39].mxu1 }
 0x5a5   : > { %v4111_v3 = vadd.f32 %v4110_v50, %v4109_v45  ;;  %v4103_v38 = vsel %vm217_vm0, %v3801_v37, 0.0 }
 0x5a6   : > { %v4104_v27 = vadd.f32 %v4103_v38, %v4102_v26 }
 0x5ab   : > { %v4791_v39 = vpop.f32.mrb[40].mxu1 }
 0x5ac   : > { %v4124_v41 = vsel %vm217_vm0, %v4791_v39, 0.0  ;;  %v3811_v24 = vpop.f32.mrb[41].mxu1 }
 0x5ad   : > { %v4125_v28 = vadd.f32 %v4124_v41, %v4123_v55  ;;  %v4117_v62 = vsel %vm217_vm0, %v3811_v24, 0.0 }
 0x5ae   : > { %v4118_v61 = vadd.f32 %v4117_v62, %v4116_v12 }
 0x5b3   : > { %v4794_v22 = vpop.f32.mrb[42].mxu1 }
 0x5b4   : > { %v4138_v9 = vsel %vm217_vm0, %v4794_v22, 0.0  ;;  %v4801_v46 = vpop.f32.mrb[52].mxu0  ;;  %v3821_v1 = vpop.f32.mrb[43].mxu1 }
 0x5b5   : > { %v4139_v32 = vadd.f32 %v4138_v9, %v4137_v13  ;;  %v4098_v35 = vsel %vm217_vm0, %v4801_v46, 0.0  ;;  %v4131_v17 = vsel %vm217_vm0, %v3821_v1, 0.0  ;;  %v3920_v49 = vpop.f32.mrb[53].mxu0 }
 0x5b6   : > { %v4099_v59 = vadd.f32 %v4098_v35, %v4097_v47  ;;  %v4132_v43 = vadd.f32 %v4131_v17, %v4130_v30  ;;  %v4091_v34 = vsel %vm217_vm0, %v3920_v49, 0.0 }
 0x5b7   : > { %v4092_v4 = vadd.f32 %v4091_v34, %v4090_v53 }
 0x5bb   : > { %v4804_v19 = vpop.f32.mrb[54].mxu0 }
 0x5bc   : > { %v4112_v60 = vsel %vm217_vm0, %v4804_v19, 0.0  ;;  %v3930_v16 = vpop.f32.mrb[55].mxu0 }
 0x5bd   : > { %v4113_v56 = vadd.f32 %v4112_v60, %v4111_v3  ;;  %v4105_v48 = vsel %vm217_vm0, %v3930_v16, 0.0 }
 0x5be   : > { %v4106_v57 = vadd.f32 %v4105_v48, %v4104_v27 }
 0x5bf   : > { %v4807_v10 = vpop.f32.mrb[56].mxu0 }
 0x5c0   : > { %v4126_v21 = vsel %vm217_vm0, %v4807_v10, 0.0  ;;  %v3940_v33 = vpop.f32.mrb[57].mxu0 }
 0x5c1   : > { %v4127_v18 = vadd.f32 %v4126_v21, %v4125_v28  ;;  %v4119_v2 = vsel %vm217_vm0, %v3940_v33, 0.0 }
 0x5c2   : > { %v4120_v8 = vadd.f32 %v4119_v2, %v4118_v61 }
 0x5c4   : > { %v4810_v31 = vpop.f32.mrb[58].mxu0 }
 0x5c5   : > { %v4140_v44 = vsel %vm217_vm0, %v4810_v31, 0.0  ;;  %v4817_v6 = vpop.f32.mrb[44].mxu1  ;;  %v3950_v58 = vpop.f32.mrb[59].mxu0 }
 0x5c6   : > { %v4141_v0 = vadd.f32 %v4140_v44, %v4139_v32  ;;  %v4100_v11 = vsel %vm217_vm0, %v4817_v6, 0.0  ;;  %v4133_v23 = vsel %vm217_vm0, %v3950_v58, 0.0  ;;  %v4049_v15 = vpop.f32.mrb[45].mxu1 }
 0x5c7   : > { %v4101_v20 = vadd.f32 %v4100_v11, %v4099_v59  ;;  %v4134_v29 = vadd.f32 %v4133_v23, %v4132_v43  ;;  %v4093_v54 = vsel %vm217_vm0, %v4049_v15, 0.0 }
 0x5c8   : > { %v4094_v14 = vadd.f32 %v4093_v54, %v4092_v4 }
 0x5c9   : > { %v4152_v42 = vadd.f32 %v4368_v52, %v4101_v20 }
 0x5ca   : > { %v4151_v36 = vadd.f32 %v4368_v52, %v4094_v14 }
 0x5cb   : > { %4160 = vst.msk [vmem:[%s6195_s13 + $0x8] sm:$0xff] %vm217_vm0, %v4152_v42 }
 0x5cc   : > { %4159 = vst.msk [vmem:[%s6195_s13] sm:$0xff] %vm217_vm0, %v4151_v36 }
 0x5e9   : > { %v4820_v7 = vpop.f32.mrb[46].mxu1 }
 0x5ea   : > { %v4114_v25 = vsel %vm217_vm0, %v4820_v7, 0.0  ;;  %v4059_v40 = vpop.f32.mrb[47].mxu1 }
 0x5eb   : > { %v4115_v63 = vadd.f32 %v4114_v25, %v4113_v56  ;;  %v4107_v47 = vsel %vm217_vm0, %v4059_v40, 0.0 }
 0x5ec   : > { %v4108_v5 = vadd.f32 %v4107_v47, %v4106_v57 }
 0x5ed   : > { %v4154_v53 = vadd.f32 %v4368_v52, %v4115_v63 }
 0x5ee   : > { %v4153_v51 = vadd.f32 %v4368_v52, %v4108_v5 }
 0x5ef   : > { %4162 = vst.msk [vmem:[%s6195_s13 + $0x18] sm:$0xff] %vm217_vm0, %v4154_v53 }
 0x5f0   : > { %4161 = vst.msk [vmem:[%s6195_s13 + $0x10] sm:$0xff] %vm217_vm0, %v4153_v51 }
 0x5f2   : > { %v4823_v45 = vpop.f32.mrb[48].mxu1 }
 0x5f3   : > { %v4128_v50 = vsel %vm217_vm0, %v4823_v45, 0.0  ;;  %v4069_v37 = vpop.f32.mrb[49].mxu1 }
 0x5f4   : > { %v4129_v26 = vadd.f32 %v4128_v50, %v4127_v18  ;;  %v4121_v3 = vsel %vm217_vm0, %v4069_v37, 0.0 }
 0x5f5   : > { %v4122_v38 = vadd.f32 %v4121_v3, %v4120_v8 }
 0x5f6   : > { %v4156_v27 = vadd.f32 %v4368_v52, %v4129_v26 }
 0x5f7   : > { %v4155_v39 = vadd.f32 %v4368_v52, %v4122_v38 }
 0x5f8   : > { %4164 = vst.msk [vmem:[%s6195_s13 + $0x28] sm:$0xff] %vm217_vm0, %v4156_v27 }
 0x5f9   : > { %4163 = vst.msk [vmem:[%s6195_s13 + $0x20] sm:$0xff] %vm217_vm0, %v4155_v39  ;;  %v4826_v55 = vpop.f32.mrb[50].mxu1 }
 0x5fa   : > { %v4142_v41 = vsel %vm217_vm0, %v4826_v55, 0.0  ;;  %v4079_v24 = vpop.f32.mrb[51].mxu1 }
 0x5fb   : > { %v4143_v12 = vadd.f32 %v4142_v41, %v4141_v0  ;;  %v4135_v28 = vsel %vm217_vm0, %v4079_v24, 0.0 }
 0x5fc   : > { %v4136_v62 = vadd.f32 %v4135_v28, %v4134_v29 }
 0x5fd   : > { %v4158_v61 = vadd.f32 %v4368_v52, %v4143_v12 }
 0x5fe   : > { %v4157_v22 = vadd.f32 %v4368_v52, %v4136_v62 }
 0x5ff   : > { %4166 = vst.msk [vmem:[%s6195_s13 + $0x38] sm:$0xff] %vm217_vm0, %v4158_v61 }
 0x600   : > { %4165 = vst.msk [vmem:[%s6195_s13 + $0x30] sm:$0xff] %vm217_vm0, %v4157_v22 }
 0x601 PF: > { %s14_s15 = sadd.s32 1, %s5298_s15  }
 0x602   : > { %p11_p4 = scmp.ge.s32.totalorder %s14_s15, 4  }
 0x604   :  { %13 = sbr.rel (!%p11_p4) target bundleno = 1 (0x1), region = 66 }

</bundles_post_ra>
